<compile_context>
chip_gen: v5e
topology: v5e:2x2
jax: 0.10.0
libtpu: 0.0.40
codegen_flags: <defaults>
</compile_context>

<pallas_src>
import jax
import jax.numpy as jnp
from jax.experimental import pallas as pl
from jax.experimental.pallas import tpu as pltpu

NEG_FILL = -1e30  # fill for non-edges; exp(NEG_FILL - finite_max) underflows to 0.


# --------------------------------------------------------------------------- #
# Geometry helpers (generation-aware)
# --------------------------------------------------------------------------- #
def _round_up(v, m):
    return ((v + m - 1) // m) * m


def _full_spec(shape):
    nd = len(shape)
    return pl.BlockSpec(tuple(shape), lambda *_: (0,) * nd)


def _vmem_capacity_bytes():
    try:
        info = pltpu.get_tpu_info()
        cap = getattr(info, "vmem_capacity_bytes", None)
        if cap:
            return int(cap)
    except Exception:
        pass
    return 64 * 1024 * 1024  # conservative (v7x-sized) fallback


def _gat_geometry(n, heads):
    """Pick (N_pad, dst-row tile, vmem limit) based on the chip's VMEM capacity."""
    vmem_cap = _vmem_capacity_bytes()
    if vmem_cap >= 96 * 1024 * 1024:        # v5e / v6e: 128 MiB VMEM
        vmem_limit = 100 * 1024 * 1024
        score_budget = 64 * 1024 * 1024     # double-buffered bf16 score block budget
        tq_max = 512
    else:                                   # v7x: 64 MiB VMEM per TensorCore
        vmem_limit = 44 * 1024 * 1024
        score_budget = 24 * 1024 * 1024
        tq_max = 256
    n128 = _round_up(max(n, 1), 128)        # lane dim of score tile / matmul K dim
    tq = min(tq_max, n128)
    # double-buffered bf16 scores block = 2 * H * tq * Np * 2 bytes
    while tq > 8 and 4 * heads * tq * n128 > score_budget:
        tq //= 2
    tq = max(8, tq)
    n_pad = _round_up(n128, tq)
    return n_pad, tq, vmem_limit


# --------------------------------------------------------------------------- #
# Kernels
# --------------------------------------------------------------------------- #
def bn_pair_kernel(x_ref, gx_ref, bx_ref, e_ref, ge_ref, be_ref, xo_ref, eo_ref):
    """Training-mode BatchNorm1d on node AND edge features in one launch."""
    def norm(v, g, b):
        mean = jnp.mean(v, axis=0, keepdims=True)
        var = jnp.mean((v - mean) ** 2, axis=0, keepdims=True)
        return (v - mean) * jax.lax.rsqrt(var + 1e-5) * g + b

    xo_ref[...] = norm(x_ref[...], gx_ref[...], bx_ref[...])
    eo_ref[...] = norm(e_ref[...], ge_ref[...], be_ref[...])


def value_proj_kernel(x_ref, w_ref, o_ref):
    """Per-(head, row-tile) value projection xh = x @ W_h. bf16 MXU operands, f32 acc,
    stored as bf16 (it is the RHS operand of the aggregation matmul)."""
    bf16 = jnp.bfloat16
    o_ref[0] = jnp.dot(x_ref[...].astype(bf16), w_ref[0].astype(bf16),
                       preferred_element_type=jnp.float32).astype(bf16)


def gat_layer_kernel(xh_ref, s_ref, bias_ref, o_ref):
    """Fused GAT softmax + aggregation + bias + ELU for one dst-row tile, all heads.

    xh_ref  : [H, Np, C]  bf16 projected values (resident; constant index map)
    s_ref   : [H, tq, Np] bf16 pre-activation scores (LeakyReLU'd per edge,
                          non-edges = -1e30); rows = dst, cols = src
    bias_ref: [1, H*C]    f32 GATConv bias (post-concat layout)
    o_ref   : [tq, H*C]   f32 ELU(concat_h(sum_j alpha_ij * xh_j) + bias)
    """
    H = xh_ref.shape[0]
    bf16 = jnp.bfloat16
    outs = []
    for h in range(H):                                      # H is small and static
        s = s_ref[h].astype(jnp.float32)                    # [tq, Np]
        m = jnp.max(s, axis=-1, keepdims=True)              # [tq, 1]
        p = jnp.exp(s - m)                                  # unnormalised, in [0,1]
        denom = jnp.sum(p, axis=-1, keepdims=True)          # [tq, 1]
        acc = jnp.dot(p.astype(bf16), xh_ref[h],            # bf16 MXU, f32 acc
                      preferred_element_type=jnp.float32)   # [tq, C]
        # Normalise AFTER the matmul: [tq, C] VPU work instead of [tq, Np].
        acc = acc * pl.reciprocal(denom, approx=True)       # EUP slot
        outs.append(acc)
    out = jnp.concatenate(outs, axis=-1) + bias_ref[...]    # [tq, H*C]
    # ELU without generating inf on the discarded branch.
    o_ref[...] = jnp.where(out > 0.0, out, jnp.exp(jnp.minimum(out, 0.0)) - 1.0)


def edge_mlp_kernel(hs_ref, ht_ref, ea_ref, w1s_ref, w1t_ref, w1e_ref,
                    b1_ref, w2_ref, b2_ref, o_ref):
    """Edge MLP tile: Linear -> ReLU -> Linear(1), W1 split over [h_src|h_dst|edge_attr]
    (no concat materialised); width-1 head as VPU mul + lane reduce."""
    bf16, f32 = jnp.bfloat16, jnp.float32
    h = (jnp.dot(hs_ref[...].astype(bf16), w1s_ref[...].astype(bf16),
                 preferred_element_type=f32)
         + jnp.dot(ht_ref[...].astype(bf16), w1t_ref[...].astype(bf16),
                   preferred_element_type=f32)
         + jnp.dot(ea_ref[...].astype(bf16), w1e_ref[...].astype(bf16),
                   preferred_element_type=f32)
         + b1_ref[...])
    h = jnp.maximum(h, 0.0)
    o_ref[...] = jnp.sum(h * w2_ref[...], axis=-1, keepdims=True) + b2_ref[...]


# --------------------------------------------------------------------------- #
# Wrappers
# --------------------------------------------------------------------------- #
def batchnorm_pair_pallas(x, gx, bx, e, ge, be):
    args = (x, gx, bx, e, ge, be)
    return pl.pallas_call(
        bn_pair_kernel,
        out_shape=(jax.ShapeDtypeStruct(x.shape, jnp.float32),
                   jax.ShapeDtypeStruct(e.shape, jnp.float32)),
        in_specs=[_full_spec(a.shape) for a in args],
        out_specs=(_full_spec(x.shape), _full_spec(e.shape)),
    )(*args)


def value_proj_pallas(x_pad, w_val, tp, vmem_limit):
    """x_pad: [Np, F_in] f32, w_val: [H, F_in, C] f32 -> xh: [H, Np, C] bf16."""
    H, F_in, C = w_val.shape
    n_pad = x_pad.shape[0]
    return pl.pallas_call(
        value_proj_kernel,
        out_shape=jax.ShapeDtypeStruct((H, n_pad, C), jnp.bfloat16),
        grid_spec=pltpu.PrefetchScalarGridSpec(
            num_scalar_prefetch=0,
            grid=(H, n_pad // tp),
            in_specs=[
                pl.BlockSpec((tp, F_in), lambda h, r: (r, 0)),
                pl.BlockSpec((1, F_in, C), lambda h, r: (h, 0, 0)),
            ],
            out_specs=pl.BlockSpec((1, tp, C), lambda h, r: (h, r, 0)),
        ),
        compiler_params=pltpu.CompilerParams(
            dimension_semantics=("parallel", "parallel"),
            vmem_limit_bytes=vmem_limit),
    )(x_pad, w_val)


def gat_layer_pallas(xh, scores, bias, tq, vmem_limit):
    """xh: [H, Np, C] bf16 (hoisted projection), scores: [H, Np, Np] bf16 (leaky,
    -1e30 fill), bias: [1, H*C] f32. Returns [Np, H*C] f32 (ELU applied), already in
    the layout the next layer / edge MLP consume."""
    H, n_pad, C = xh.shape
    return pl.pallas_call(
        gat_layer_kernel,
        out_shape=jax.ShapeDtypeStruct((n_pad, H * C), jnp.float32),
        grid_spec=pltpu.PrefetchScalarGridSpec(
            num_scalar_prefetch=0,
            grid=(n_pad // tq,),
            in_specs=[
                pl.BlockSpec((H, n_pad, C), lambda q: (0, 0, 0)),   # resident
                pl.BlockSpec((H, tq, n_pad), lambda q: (0, q, 0)),  # streamed (bf16)
                pl.BlockSpec((1, H * C), lambda q: (0, 0)),
            ],
            out_specs=pl.BlockSpec((tq, H * C), lambda q: (q, 0)),  # lane-dense slab
        ),
        compiler_params=pltpu.CompilerParams(
            dimension_semantics=("parallel",),   # q-axis sharding feeds both v7x TCs
            vmem_limit_bytes=vmem_limit),
    )(xh, scores, bias)


def edge_mlp_pallas(h_src, h_dst, ea, w1s, w1t, w1e, b1, w2, b2, vmem_limit):
    E = h_src.shape[0]
    te = min(512, _round_up(E, 8))
    e_pad = _round_up(E, te)

    def pad_rows(a):
        return jnp.zeros((e_pad, a.shape[1]), a.dtype).at[:E].set(a)

    hs, ht, eap = pad_rows(h_src), pad_rows(h_dst), pad_rows(ea)
    HC, Fe, hid = h_src.shape[1], ea.shape[1], w1s.shape[1]
    out = pl.pallas_call(
        edge_mlp_kernel,
        out_shape=jax.ShapeDtypeStruct((e_pad, 1), jnp.float32),
        grid_spec=pltpu.PrefetchScalarGridSpec(
            num_scalar_prefetch=0,
            grid=(e_pad // te,),
            in_specs=[
                pl.BlockSpec((te, HC), lambda e: (e, 0)),
                pl.BlockSpec((te, HC), lambda e: (e, 0)),
                pl.BlockSpec((te, Fe), lambda e: (e, 0)),
                pl.BlockSpec((HC, hid), lambda e: (0, 0)),   # weights: VMEM-resident
                pl.BlockSpec((HC, hid), lambda e: (0, 0)),
                pl.BlockSpec((Fe, hid), lambda e: (0, 0)),
                pl.BlockSpec((1, hid), lambda e: (0, 0)),
                pl.BlockSpec((1, hid), lambda e: (0, 0)),
                pl.BlockSpec((1, 1), lambda e: (0, 0)),
            ],
            out_specs=pl.BlockSpec((te, 1), lambda e: (e, 0)),
        ),
        compiler_params=pltpu.CompilerParams(
            dimension_semantics=("parallel",),
            vmem_limit_bytes=vmem_limit),
    )(hs, ht, eap, w1s, w1t, w1e, b1, w2, b2)
    return out[:E, 0]


# --------------------------------------------------------------------------- #
# Model — mirrors GNNForRLAgent.forward
# --------------------------------------------------------------------------- #
def gnn_forward(params, x, edge_index, edge_attr):
    N = x.shape[0]
    src, dst = edge_index[0], edge_index[1]

    gn, bn = params['bn_node']
    ge, be = params['bn_edge']
    x_n, ea_n = batchnorm_pair_pallas(x, gn, bn, edge_attr, ge, be)

    # add self-loops (fill_value='mean'): self-loop attr = mean of incoming edge attrs
    # NOTE: assumes no pre-existing self-loops / duplicate edges (as in PyG single-graph use).
    deg = jnp.zeros((N,), jnp.float32).at[dst].add(1.0)
    loop_attr = (jnp.zeros((N, ea_n.shape[1]), jnp.float32).at[dst].add(ea_n)
                 / jnp.maximum(deg, 1.0)[:, None])
    idx = jnp.arange(N, dtype=src.dtype)
    src_f = jnp.concatenate([src, idx])
    dst_f = jnp.concatenate([dst, idx])
    ea_f = jnp.concatenate([ea_n, loop_attr], axis=0)

    H0 = params['gat'][0]['w_val'].shape[0]
    n_pad, tq, vmem_limit = _gat_geometry(N, H0)

    h = jnp.zeros((n_pad, x_n.shape[1]), jnp.float32).at[:N].set(x_n)

    for lp in params['gat']:
        H = lp['w_val'].shape[0]
        # Per-edge attention logits via folded attention vectors (O(E) glue, not O(N^2)):
        #   a_src[n,h] = x[n] . (W_h^T att_src_h) etc. — identical to PyG's
        #   (lin(x).view(N,H,C) * att_src).sum(-1).
        a_src = h @ lp['v_src']                               # [Np, H]
        a_dst = h @ lp['v_dst']                               # [Np, H]
        a_edge = ea_f @ lp['v_edge']                          # [E', H]
        alpha = a_src[src_f] + a_dst[dst_f] + a_edge          # [E', H]
        alpha = jnp.where(alpha > 0.0, alpha, 0.2 * alpha)    # LeakyReLU(0.2), per edge
        # Dense scores in bf16: rows = dst, cols = src; non-edges stay at -1e30.
        # Fully-padded dst rows (N..N_pad) give a uniform softmax over garbage xh; the
        # result is discarded, the math stays finite.
        scores = jnp.full((H, n_pad, n_pad), NEG_FILL, jnp.bfloat16)
        scores = scores.at[:, dst_f, src_f].set(alpha.T.astype(jnp.bfloat16))
        xh = value_proj_pallas(h, lp['w_val'], tq, vmem_limit)      # [H, Np, C] bf16
        h = gat_layer_pallas(xh, scores, lp['bias'], tq, vmem_limit)  # [Np, H*C] f32

    h_src = h[src]
    h_dst = h[dst]
    m = params['mlp']
    logits = edge_mlp_pallas(h_src, h_dst, ea_n,
                             m['w1s'], m['w1t'], m['w1e'], m['b1'], m['w2'], m['b2'],
                             vmem_limit)
    return logits


# --------------------------------------------------------------------------- #
# Deterministic parameter init (synthetic; shapes follow module __init__),
# pre-arranged into the kernel-friendly layouts.
# --------------------------------------------------------------------------- #
def init_params(key, num_node_features, num_edge_features, hidden, heads, num_gat_layers):
    H, C, Fe = heads, hidden, num_edge_features
    params = {
        'bn_node': (jnp.ones((1, num_node_features), jnp.float32),
                    jnp.zeros((1, num_node_features), jnp.float32)),
        'bn_edge': (jnp.ones((1, Fe), jnp.float32),
                    jnp.zeros((1, Fe), jnp.float32)),
    }
    gat = []
    in_dim = num_node_features
    for _ in range(num_gat_layers):
        key, k0, k1, k2, k3, k4 = jax.random.split(key, 6)
        w_lin = jax.random.normal(k0, (H * C, in_dim), jnp.float32) / jnp.sqrt(in_dim)
        w_edge = jax.random.normal(k1, (H * C, Fe), jnp.float32) / jnp.sqrt(Fe)
        att_src = jax.random.normal(k2, (H, C), jnp.float32) * 0.1
        att_dst = jax.random.normal(k3, (H, C), jnp.float32) * 0.1
        att_edge = jax.random.normal(k4, (H, C), jnp.float32) * 0.1
        bias = jnp.zeros((H * C,), jnp.float32)

        w3 = w_lin.reshape(H, C, in_dim)          # [H, C, F_in]
        e3 = w_edge.reshape(H, C, Fe)             # [H, C, Fe]
        gat.append(dict(
            w_val=jnp.transpose(w3, (0, 2, 1)),                   # [H, F_in, C]
            v_src=jnp.einsum('hcf,hc->fh', w3, att_src),          # [F_in, H]
            v_dst=jnp.einsum('hcf,hc->fh', w3, att_dst),          # [F_in, H]
            v_edge=jnp.einsum('hcf,hc->fh', e3, att_edge),        # [Fe, H]
            bias=bias.reshape(1, H * C),                          # [1, H*C]
        ))
        in_dim = H * C
    params['gat'] = gat

    HC = H * C
    mlp_in = 2 * HC + Fe
    key, k1, k2 = jax.random.split(key, 3)
    w1 = jax.random.normal(k1, (hidden, mlp_in), jnp.float32) / jnp.sqrt(mlp_in)
    w2 = jax.random.normal(k2, (1, hidden), jnp.float32) / jnp.sqrt(hidden)
    params['mlp'] = dict(
        w1s=jnp.transpose(w1[:, :HC]),            # [HC, hidden]
        w1t=jnp.transpose(w1[:, HC:2 * HC]),      # [HC, hidden]
        w1e=jnp.transpose(w1[:, 2 * HC:]),        # [Fe, hidden]
        b1=jnp.zeros((1, hidden), jnp.float32),
        w2=w2,                                    # [1, hidden]
        b2=jnp.zeros((1, 1), jnp.float32),
    )
    return params


# --------------------------------------------------------------------------- #
if __name__ == "__main__":
    N, E = 10, 20
    num_node_features, num_edge_features = 8, 6
    hidden_dim, num_heads, num_gat_layers = 16, 2, 2

    key = jax.random.PRNGKey(0)
    k_x, k_e, k_p = jax.random.split(key, 3)

    x = jax.random.normal(k_x, (N, num_node_features), jnp.float32)
    edge_attr = jax.random.normal(k_e, (E, num_edge_features), jnp.float32)

    # deterministic simple graph: E distinct directed pairs, no self loops
    pairs = [(i, j) for i in range(N) for j in range(N) if i != j]
    sel = pairs[::max(1, len(pairs) // E)][:E]
    src = jnp.array([p[0] for p in sel], jnp.int32)
    dst = jnp.array([p[1] for p in sel], jnp.int32)
    edge_index = jnp.stack([src, dst])

    params = init_params(k_p, num_node_features, num_edge_features,
                         hidden_dim, num_heads, num_gat_layers)

    fwd = jax.jit(gnn_forward)
    logits = fwd(params, x, edge_index, edge_attr)
    logits = jax.block_until_ready(logits)

    assert logits.shape == (E,), logits.shape
    assert bool(jnp.all(jnp.isfinite(logits)))
    print("KERNEL_OK")
</pallas_src>

<mosaic_0001>
module attributes {stable_mosaic.version = 11 : i64} {
  func.func @bn_pair_kernel(%arg0: memref<10x8xf32, #tpu.memory_space<vmem>>, %arg1: memref<1x8xf32, #tpu.memory_space<vmem>>, %arg2: memref<1x8xf32, #tpu.memory_space<vmem>>, %arg3: memref<20x6xf32, #tpu.memory_space<vmem>>, %arg4: memref<1x6xf32, #tpu.memory_space<vmem>>, %arg5: memref<1x6xf32, #tpu.memory_space<vmem>>, %arg6: memref<10x8xf32, #tpu.memory_space<vmem>>, %arg7: memref<20x6xf32, #tpu.memory_space<vmem>>) attributes {dimension_semantics = [], scalar_prefetch = 0 : i64, scratch_operands = 0 : i64, tpu.core_type = #tpu.core_type<tc>} {
    %c0 = arith.constant 0 : index
    %c0_0 = arith.constant 0 : index
    %0 = vector.load %arg0[%c0, %c0_0] : memref<10x8xf32, #tpu.memory_space<vmem>>, vector<10x8xf32>
    %c0_1 = arith.constant 0 : index
    %c0_2 = arith.constant 0 : index
    %1 = vector.load %arg1[%c0_1, %c0_2] : memref<1x8xf32, #tpu.memory_space<vmem>>, vector<1x8xf32>
    %c0_3 = arith.constant 0 : index
    %c0_4 = arith.constant 0 : index
    %2 = vector.load %arg2[%c0_3, %c0_4] : memref<1x8xf32, #tpu.memory_space<vmem>>, vector<1x8xf32>
    %cst = arith.constant dense<0.000000e+00> : vector<8xf32>
    %3 = vector.multi_reduction <add>, %0, %cst [0] : vector<10x8xf32> to vector<8xf32>
    %4 = vector.shape_cast %3 : vector<8xf32> to vector<1x8xf32>
    %cst_5 = arith.constant 1.000000e+01 : f32
    %5 = vector.broadcast %cst_5 : f32 to vector<1x8xf32>
    %6 = arith.divf %4, %5 : vector<1x8xf32>
    %7 = vector.broadcast %6 : vector<1x8xf32> to vector<10x8xf32>
    %8 = arith.subf %0, %7 : vector<10x8xf32>
    %9 = arith.mulf %8, %8 : vector<10x8xf32>
    %cst_6 = arith.constant dense<0.000000e+00> : vector<8xf32>
    %10 = vector.multi_reduction <add>, %9, %cst_6 [0] : vector<10x8xf32> to vector<8xf32>
    %11 = vector.shape_cast %10 : vector<8xf32> to vector<1x8xf32>
    %cst_7 = arith.constant 1.000000e+01 : f32
    %12 = vector.broadcast %cst_7 : f32 to vector<1x8xf32>
    %13 = arith.divf %11, %12 : vector<1x8xf32>
    %14 = vector.broadcast %6 : vector<1x8xf32> to vector<10x8xf32>
    %15 = arith.subf %0, %14 : vector<10x8xf32>
    %cst_8 = arith.constant 9.99999974E-6 : f32
    %16 = vector.broadcast %cst_8 : f32 to vector<1x8xf32>
    %17 = arith.addf %13, %16 : vector<1x8xf32>
    %18 = math.rsqrt %17 : vector<1x8xf32>
    %19 = vector.broadcast %18 : vector<1x8xf32> to vector<10x8xf32>
    %20 = arith.mulf %15, %19 : vector<10x8xf32>
    %21 = vector.broadcast %1 : vector<1x8xf32> to vector<10x8xf32>
    %22 = arith.mulf %20, %21 : vector<10x8xf32>
    %23 = vector.broadcast %2 : vector<1x8xf32> to vector<10x8xf32>
    %24 = arith.addf %22, %23 : vector<10x8xf32>
    %c0_9 = arith.constant 0 : index
    %c0_10 = arith.constant 0 : index
    %25 = vector.load %arg6[%c0_9, %c0_10] : memref<10x8xf32, #tpu.memory_space<vmem>>, vector<10x8xf32>
    tpu.vector_store %arg6[%c0_9, %c0_10], %24 {strides = array<i32>} : memref<10x8xf32, #tpu.memory_space<vmem>>, vector<10x8xf32>,
    %c0_11 = arith.constant 0 : index
    %c0_12 = arith.constant 0 : index
    %26 = vector.load %arg3[%c0_11, %c0_12] : memref<20x6xf32, #tpu.memory_space<vmem>>, vector<20x6xf32>
    %c0_13 = arith.constant 0 : index
    %c0_14 = arith.constant 0 : index
    %27 = vector.load %arg4[%c0_13, %c0_14] : memref<1x6xf32, #tpu.memory_space<vmem>>, vector<1x6xf32>
    %c0_15 = arith.constant 0 : index
    %c0_16 = arith.constant 0 : index
    %28 = vector.load %arg5[%c0_15, %c0_16] : memref<1x6xf32, #tpu.memory_space<vmem>>, vector<1x6xf32>
    %cst_17 = arith.constant dense<0.000000e+00> : vector<6xf32>
    %29 = vector.multi_reduction <add>, %26, %cst_17 [0] : vector<20x6xf32> to vector<6xf32>
    %30 = vector.shape_cast %29 : vector<6xf32> to vector<1x6xf32>
    %cst_18 = arith.constant 2.000000e+01 : f32
    %31 = vector.broadcast %cst_18 : f32 to vector<1x6xf32>
    %32 = arith.divf %30, %31 : vector<1x6xf32>
    %33 = vector.broadcast %32 : vector<1x6xf32> to vector<20x6xf32>
    %34 = arith.subf %26, %33 : vector<20x6xf32>
    %35 = arith.mulf %34, %34 : vector<20x6xf32>
    %cst_19 = arith.constant dense<0.000000e+00> : vector<6xf32>
    %36 = vector.multi_reduction <add>, %35, %cst_19 [0] : vector<20x6xf32> to vector<6xf32>
    %37 = vector.shape_cast %36 : vector<6xf32> to vector<1x6xf32>
    %cst_20 = arith.constant 2.000000e+01 : f32
    %38 = vector.broadcast %cst_20 : f32 to vector<1x6xf32>
    %39 = arith.divf %37, %38 : vector<1x6xf32>
    %40 = vector.broadcast %32 : vector<1x6xf32> to vector<20x6xf32>
    %41 = arith.subf %26, %40 : vector<20x6xf32>
    %cst_21 = arith.constant 9.99999974E-6 : f32
    %42 = vector.broadcast %cst_21 : f32 to vector<1x6xf32>
    %43 = arith.addf %39, %42 : vector<1x6xf32>
    %44 = math.rsqrt %43 : vector<1x6xf32>
    %45 = vector.broadcast %44 : vector<1x6xf32> to vector<20x6xf32>
    %46 = arith.mulf %41, %45 : vector<20x6xf32>
    %47 = vector.broadcast %27 : vector<1x6xf32> to vector<20x6xf32>
    %48 = arith.mulf %46, %47 : vector<20x6xf32>
    %49 = vector.broadcast %28 : vector<1x6xf32> to vector<20x6xf32>
    %50 = arith.addf %48, %49 : vector<20x6xf32>
    %c0_22 = arith.constant 0 : index
    %c0_23 = arith.constant 0 : index
    %51 = vector.load %arg7[%c0_22, %c0_23] : memref<20x6xf32, #tpu.memory_space<vmem>>, vector<20x6xf32>
    tpu.vector_store %arg7[%c0_22, %c0_23], %50 {strides = array<i32>} : memref<20x6xf32, #tpu.memory_space<vmem>>, vector<20x6xf32>,
    return
  }
}

module attributes {stable_mosaic.version = 11 : i64} {
  func.func @gat_layer_kernel(%arg0: i32, %arg1: memref<2x128x16xbf16, #tpu.memory_space<vmem>>, %arg2: memref<2x128x128xbf16, #tpu.memory_space<vmem>>, %arg3: memref<1x32xf32, #tpu.memory_space<vmem>>, %arg4: memref<128x32xf32, #tpu.memory_space<vmem>>) attributes {dimension_semantics = [#tpu.dimension_semantics<parallel>], iteration_bounds = array<i64: 1>, scalar_prefetch = 0 : i64, scratch_operands = 0 : i64, tpu.core_type = #tpu.core_type<tc>, window_params = [{pipeline_mode = #tpu.pipeline_mode<synchronous>, transform_indices = @transform_0, window_bounds = array<i64: 2, 128, 16>}, {transform_indices = @transform_1, window_bounds = array<i64: 2, 128, 128>}, {pipeline_mode = #tpu.pipeline_mode<synchronous>, transform_indices = @transform_2, window_bounds = array<i64: 1, 32>}, {transform_indices = @transform_3, window_bounds = array<i64: 128, 32>}]} {
    %c0 = arith.constant 0 : index
    %c0_0 = arith.constant 0 : index
    %c0_1 = arith.constant 0 : index
    %0 = vector.load %arg2[%c0, %c0_0, %c0_1] : memref<2x128x128xbf16, #tpu.memory_space<vmem>>, vector<1x128x128xbf16>
    %1 = vector.shape_cast %0 : vector<1x128x128xbf16> to vector<128x128xbf16>
    %2 = arith.extf %1 : vector<128x128xbf16> to vector<128x128xf32>
    %cst = arith.constant dense<0xFF800000> : vector<128xf32>
    %3 = vector.multi_reduction <maximumf>, %2, %cst [1] : vector<128x128xf32> to vector<128xf32>
    %4 = vector.shape_cast %3 : vector<128xf32> to vector<128x1xf32>
    %5 = vector.broadcast %4 : vector<128x1xf32> to vector<128x128xf32>
    %6 = arith.subf %2, %5 : vector<128x128xf32>
    %7 = math.exp %6 : vector<128x128xf32>
    %cst_2 = arith.constant dense<0.000000e+00> : vector<128xf32>
    %8 = vector.multi_reduction <add>, %7, %cst_2 [1] : vector<128x128xf32> to vector<128xf32>
    %9 = vector.shape_cast %8 : vector<128xf32> to vector<128x1xf32>
    %10 = arith.truncf %7 : vector<128x128xf32> to vector<128x128xbf16>
    %c0_3 = arith.constant 0 : index
    %c0_4 = arith.constant 0 : index
    %c0_5 = arith.constant 0 : index
    %11 = vector.load %arg1[%c0_3, %c0_4, %c0_5] : memref<2x128x16xbf16, #tpu.memory_space<vmem>>, vector<1x128x16xbf16>
    %12 = vector.shape_cast %11 : vector<1x128x16xbf16> to vector<128x16xbf16>
    %cst_6 = arith.constant dense<0.000000e+00> : vector<128x16xf32>
    %13 = tpu.matmul %10, %12, %cst_6 {dimension_numbers = #tpu.dot_dimension_numbers<[1], [0], [0], [1], [0, 0, 1, 1], [], []>} : vector<128x128xbf16>, vector<128x16xbf16>, vector<128x16xf32> -> vector<128x16xf32>
    %14 = tpu.reciprocal %9 {approx = true} : vector<128x1xf32> -> vector<128x1xf32>
    %15 = vector.broadcast %14 : vector<128x1xf32> to vector<128x16xf32>
    %16 = arith.mulf %13, %15 : vector<128x16xf32>
    %c1 = arith.constant 1 : index
    %c0_7 = arith.constant 0 : index
    %c0_8 = arith.constant 0 : index
    %17 = vector.load %arg2[%c1, %c0_7, %c0_8] : memref<2x128x128xbf16, #tpu.memory_space<vmem>>, vector<1x128x128xbf16>
    %18 = vector.shape_cast %17 : vector<1x128x128xbf16> to vector<128x128xbf16>
    %19 = arith.extf %18 : vector<128x128xbf16> to vector<128x128xf32>
    %cst_9 = arith.constant dense<0xFF800000> : vector<128xf32>
    %20 = vector.multi_reduction <maximumf>, %19, %cst_9 [1] : vector<128x128xf32> to vector<128xf32>
    %21 = vector.shape_cast %20 : vector<128xf32> to vector<128x1xf32>
    %22 = vector.broadcast %21 : vector<128x1xf32> to vector<128x128xf32>
    %23 = arith.subf %19, %22 : vector<128x128xf32>
    %24 = math.exp %23 : vector<128x128xf32>
    %cst_10 = arith.constant dense<0.000000e+00> : vector<128xf32>
    %25 = vector.multi_reduction <add>, %24, %cst_10 [1] : vector<128x128xf32> to vector<128xf32>
    %26 = vector.shape_cast %25 : vector<128xf32> to vector<128x1xf32>
    %27 = arith.truncf %24 : vector<128x128xf32> to vector<128x128xbf16>
    %c1_11 = arith.constant 1 : index
    %c0_12 = arith.constant 0 : index
    %c0_13 = arith.constant 0 : index
    %28 = vector.load %arg1[%c1_11, %c0_12, %c0_13] : memref<2x128x16xbf16, #tpu.memory_space<vmem>>, vector<1x128x16xbf16>
    %29 = vector.shape_cast %28 : vector<1x128x16xbf16> to vector<128x16xbf16>
    %cst_14 = arith.constant dense<0.000000e+00> : vector<128x16xf32>
    %30 = tpu.matmul %27, %29, %cst_14 {dimension_numbers = #tpu.dot_dimension_numbers<[1], [0], [0], [1], [0, 0, 1, 1], [], []>} : vector<128x128xbf16>, vector<128x16xbf16>, vector<128x16xf32> -> vector<128x16xf32>
    %31 = tpu.reciprocal %26 {approx = true} : vector<128x1xf32> -> vector<128x1xf32>
    %32 = vector.broadcast %31 : vector<128x1xf32> to vector<128x16xf32>
    %33 = arith.mulf %30, %32 : vector<128x16xf32>
    %34 = tpu.concatenate %16, %33 in 1 : vector<128x16xf32>, vector<128x16xf32> -> vector<128x32xf32>
    %c0_15 = arith.constant 0 : index
    %c0_16 = arith.constant 0 : index
    %35 = vector.load %arg3[%c0_15, %c0_16] : memref<1x32xf32, #tpu.memory_space<vmem>>, vector<1x32xf32>
    %36 = vector.broadcast %35 : vector<1x32xf32> to vector<128x32xf32>
    %37 = arith.addf %34, %36 : vector<128x32xf32>
    %cst_17 = arith.constant 0.000000e+00 : f32
    %38 = vector.broadcast %cst_17 : f32 to vector<128x32xf32>
    %39 = arith.cmpf ogt, %37, %38 : vector<128x32xf32>
    %cst_18 = arith.constant 0.000000e+00 : f32
    %40 = vector.broadcast %cst_18 : f32 to vector<128x32xf32>
    %41 = arith.minimumf %37, %40 : vector<128x32xf32>
    %42 = math.exp %41 : vector<128x32xf32>
    %cst_19 = arith.constant 1.000000e+00 : f32
    %43 = vector.broadcast %cst_19 : f32 to vector<128x32xf32>
    %44 = arith.subf %42, %43 : vector<128x32xf32>
    %45 = arith.select %39, %37, %44 : vector<128x32xi1>, vector<128x32xf32>
    %c0_20 = arith.constant 0 : index
    %c0_21 = arith.constant 0 : index
    %46 = vector.load %arg4[%c0_20, %c0_21] : memref<128x32xf32, #tpu.memory_space<vmem>>, vector<128x32xf32>
    tpu.vector_store %arg4[%c0_20, %c0_21], %45 {strides = array<i32>} : memref<128x32xf32, #tpu.memory_space<vmem>>, vector<128x32xf32>,
    return
  }
  func.func @transform_0(%arg0: i32) -> (i32, i32, i32) {
    %c0_i32 = arith.constant 0 : i32
    %c0_i32_0 = arith.constant 0 : i32
    %c0_i32_1 = arith.constant 0 : i32
    %c0_i32_2 = arith.constant 0 : i32
    return %c0_i32, %c0_i32_0, %c0_i32_1 : i32, i32, i32
  }
  func.func @transform_1(%arg0: i32) -> (i32, i32, i32) {
    %c0_i32 = arith.constant 0 : i32
    %c0_i32_0 = arith.constant 0 : i32
    %c0_i32_1 = arith.constant 0 : i32
    return %c0_i32, %arg0, %c0_i32_0 : i32, i32, i32
  }
  func.func @transform_2(%arg0: i32) -> (i32, i32) {
    %c0_i32 = arith.constant 0 : i32
    %c0_i32_0 = arith.constant 0 : i32
    %c0_i32_1 = arith.constant 0 : i32
    return %c0_i32, %c0_i32_0 : i32, i32
  }
  func.func @transform_3(%arg0: i32) -> (i32, i32) {
    %c0_i32 = arith.constant 0 : i32
    %c0_i32_0 = arith.constant 0 : i32
    return %arg0, %c0_i32 : i32, i32
  }
}

module attributes {stable_mosaic.version = 11 : i64} {
  func.func @value_proj_kernel(%arg0: i32, %arg1: i32, %arg2: memref<128x8xf32, #tpu.memory_space<vmem>>, %arg3: memref<1x8x16xf32, #tpu.memory_space<vmem>>, %arg4: memref<1x128x16xbf16, #tpu.memory_space<vmem>>) attributes {dimension_semantics = [#tpu.dimension_semantics<parallel>, #tpu.dimension_semantics<parallel>], iteration_bounds = array<i64: 2, 1>, scalar_prefetch = 0 : i64, scratch_operands = 0 : i64, tpu.core_type = #tpu.core_type<tc>, window_params = [{transform_indices = @transform_0, window_bounds = array<i64: 128, 8>}, {transform_indices = @transform_1, window_bounds = array<i64: 1, 8, 16>}, {transform_indices = @transform_2, window_bounds = array<i64: 1, 128, 16>}]} {
    %c0 = arith.constant 0 : index
    %c0_0 = arith.constant 0 : index
    %0 = vector.load %arg2[%c0, %c0_0] : memref<128x8xf32, #tpu.memory_space<vmem>>, vector<128x8xf32>
    %1 = arith.truncf %0 : vector<128x8xf32> to vector<128x8xbf16>
    %c0_1 = arith.constant 0 : index
    %c0_2 = arith.constant 0 : index
    %c0_3 = arith.constant 0 : index
    %2 = vector.load %arg3[%c0_1, %c0_2, %c0_3] : memref<1x8x16xf32, #tpu.memory_space<vmem>>, vector<1x8x16xf32>
    %3 = vector.shape_cast %2 : vector<1x8x16xf32> to vector<8x16xf32>
    %4 = arith.truncf %3 : vector<8x16xf32> to vector<8x16xbf16>
    %cst = arith.constant dense<0.000000e+00> : vector<128x16xf32>
    %5 = tpu.matmul %1, %4, %cst {dimension_numbers = #tpu.dot_dimension_numbers<[1], [0], [0], [1], [0, 0, 1, 1], [], []>} : vector<128x8xbf16>, vector<8x16xbf16>, vector<128x16xf32> -> vector<128x16xf32>
    %6 = arith.truncf %5 : vector<128x16xf32> to vector<128x16xbf16>
    %c0_4 = arith.constant 0 : index
    %c0_5 = arith.constant 0 : index
    %c0_6 = arith.constant 0 : index
    %7 = vector.load %arg4[%c0_4, %c0_5, %c0_6] : memref<1x128x16xbf16, #tpu.memory_space<vmem>>, vector<1x128x16xbf16>
    %8 = vector.shape_cast %7 : vector<1x128x16xbf16> to vector<128x16xbf16>
    %9 = vector.shape_cast %6 : vector<128x16xbf16> to vector<1x128x16xbf16>
    tpu.vector_store %arg4[%c0_4, %c0_5, %c0_6], %9 {strides = array<i32>} : memref<1x128x16xbf16, #tpu.memory_space<vmem>>, vector<1x128x16xbf16>,
    return
  }
  func.func @transform_0(%arg0: i32, %arg1: i32) -> (i32, i32) {
    %c0_i32 = arith.constant 0 : i32
    %c0_i32_0 = arith.constant 0 : i32
    return %arg1, %c0_i32 : i32, i32
  }
  func.func @transform_1(%arg0: i32, %arg1: i32) -> (i32, i32, i32) {
    %c0_i32 = arith.constant 0 : i32
    %c0_i32_0 = arith.constant 0 : i32
    %c0_i32_1 = arith.constant 0 : i32
    return %arg0, %c0_i32, %c0_i32_0 : i32, i32, i32
  }
  func.func @transform_2(%arg0: i32, %arg1: i32) -> (i32, i32, i32) {
    %c0_i32 = arith.constant 0 : i32
    %c0_i32_0 = arith.constant 0 : i32
    return %arg0, %arg1, %c0_i32 : i32, i32, i32
  }
}

module attributes {stable_mosaic.version = 11 : i64} {
  func.func @value_proj_kernel(%arg0: i32, %arg1: i32, %arg2: memref<128x32xf32, #tpu.memory_space<vmem>>, %arg3: memref<1x32x16xf32, #tpu.memory_space<vmem>>, %arg4: memref<1x128x16xbf16, #tpu.memory_space<vmem>>) attributes {dimension_semantics = [#tpu.dimension_semantics<parallel>, #tpu.dimension_semantics<parallel>], iteration_bounds = array<i64: 2, 1>, scalar_prefetch = 0 : i64, scratch_operands = 0 : i64, tpu.core_type = #tpu.core_type<tc>, window_params = [{transform_indices = @transform_0, window_bounds = array<i64: 128, 32>}, {transform_indices = @transform_1, window_bounds = array<i64: 1, 32, 16>}, {transform_indices = @transform_2, window_bounds = array<i64: 1, 128, 16>}]} {
    %c0 = arith.constant 0 : index
    %c0_0 = arith.constant 0 : index
    %0 = vector.load %arg2[%c0, %c0_0] : memref<128x32xf32, #tpu.memory_space<vmem>>, vector<128x32xf32>
    %1 = arith.truncf %0 : vector<128x32xf32> to vector<128x32xbf16>
    %c0_1 = arith.constant 0 : index
    %c0_2 = arith.constant 0 : index
    %c0_3 = arith.constant 0 : index
    %2 = vector.load %arg3[%c0_1, %c0_2, %c0_3] : memref<1x32x16xf32, #tpu.memory_space<vmem>>, vector<1x32x16xf32>
    %3 = vector.shape_cast %2 : vector<1x32x16xf32> to vector<32x16xf32>
    %4 = arith.truncf %3 : vector<32x16xf32> to vector<32x16xbf16>
    %cst = arith.constant dense<0.000000e+00> : vector<128x16xf32>
    %5 = tpu.matmul %1, %4, %cst {dimension_numbers = #tpu.dot_dimension_numbers<[1], [0], [0], [1], [0, 0, 1, 1], [], []>} : vector<128x32xbf16>, vector<32x16xbf16>, vector<128x16xf32> -> vector<128x16xf32>
    %6 = arith.truncf %5 : vector<128x16xf32> to vector<128x16xbf16>
    %c0_4 = arith.constant 0 : index
    %c0_5 = arith.constant 0 : index
    %c0_6 = arith.constant 0 : index
    %7 = vector.load %arg4[%c0_4, %c0_5, %c0_6] : memref<1x128x16xbf16, #tpu.memory_space<vmem>>, vector<1x128x16xbf16>
    %8 = vector.shape_cast %7 : vector<1x128x16xbf16> to vector<128x16xbf16>
    %9 = vector.shape_cast %6 : vector<128x16xbf16> to vector<1x128x16xbf16>
    tpu.vector_store %arg4[%c0_4, %c0_5, %c0_6], %9 {strides = array<i32>} : memref<1x128x16xbf16, #tpu.memory_space<vmem>>, vector<1x128x16xbf16>,
    return
  }
  func.func @transform_0(%arg0: i32, %arg1: i32) -> (i32, i32) {
    %c0_i32 = arith.constant 0 : i32
    %c0_i32_0 = arith.constant 0 : i32
    return %arg1, %c0_i32 : i32, i32
  }
  func.func @transform_1(%arg0: i32, %arg1: i32) -> (i32, i32, i32) {
    %c0_i32 = arith.constant 0 : i32
    %c0_i32_0 = arith.constant 0 : i32
    %c0_i32_1 = arith.constant 0 : i32
    return %arg0, %c0_i32, %c0_i32_0 : i32, i32, i32
  }
  func.func @transform_2(%arg0: i32, %arg1: i32) -> (i32, i32, i32) {
    %c0_i32 = arith.constant 0 : i32
    %c0_i32_0 = arith.constant 0 : i32
    return %arg0, %arg1, %c0_i32 : i32, i32, i32
  }
}

module attributes {stable_mosaic.version = 11 : i64} {
  func.func @edge_mlp_kernel(%arg0: i32, %arg1: memref<24x32xf32, #tpu.memory_space<vmem>>, %arg2: memref<24x32xf32, #tpu.memory_space<vmem>>, %arg3: memref<24x6xf32, #tpu.memory_space<vmem>>, %arg4: memref<32x16xf32, #tpu.memory_space<vmem>>, %arg5: memref<32x16xf32, #tpu.memory_space<vmem>>, %arg6: memref<6x16xf32, #tpu.memory_space<vmem>>, %arg7: memref<1x16xf32, #tpu.memory_space<vmem>>, %arg8: memref<1x16xf32, #tpu.memory_space<vmem>>, %arg9: memref<1x1xf32, #tpu.memory_space<vmem>>, %arg10: memref<24x1xf32, #tpu.memory_space<vmem>>) attributes {dimension_semantics = [#tpu.dimension_semantics<parallel>], iteration_bounds = array<i64: 1>, scalar_prefetch = 0 : i64, scratch_operands = 0 : i64, tpu.core_type = #tpu.core_type<tc>, window_params = [{transform_indices = @transform_0, window_bounds = array<i64: 24, 32>}, {transform_indices = @transform_1, window_bounds = array<i64: 24, 32>}, {transform_indices = @transform_2, window_bounds = array<i64: 24, 6>}, {pipeline_mode = #tpu.pipeline_mode<synchronous>, transform_indices = @transform_3, window_bounds = array<i64: 32, 16>}, {pipeline_mode = #tpu.pipeline_mode<synchronous>, transform_indices = @transform_4, window_bounds = array<i64: 32, 16>}, {pipeline_mode = #tpu.pipeline_mode<synchronous>, transform_indices = @transform_5, window_bounds = array<i64: 6, 16>}, {pipeline_mode = #tpu.pipeline_mode<synchronous>, transform_indices = @transform_6, window_bounds = array<i64: 1, 16>}, {pipeline_mode = #tpu.pipeline_mode<synchronous>, transform_indices = @transform_7, window_bounds = array<i64: 1, 16>}, {pipeline_mode = #tpu.pipeline_mode<synchronous>, transform_indices = @transform_8, window_bounds = array<i64: 1, 1>}, {transform_indices = @transform_9, window_bounds = array<i64: 24, 1>}]} {
    %c0 = arith.constant 0 : index
    %c0_0 = arith.constant 0 : index
    %0 = vector.load %arg1[%c0, %c0_0] : memref<24x32xf32, #tpu.memory_space<vmem>>, vector<24x32xf32>
    %1 = arith.truncf %0 : vector<24x32xf32> to vector<24x32xbf16>
    %c0_1 = arith.constant 0 : index
    %c0_2 = arith.constant 0 : index
    %2 = vector.load %arg4[%c0_1, %c0_2] : memref<32x16xf32, #tpu.memory_space<vmem>>, vector<32x16xf32>
    %3 = arith.truncf %2 : vector<32x16xf32> to vector<32x16xbf16>
    %cst = arith.constant dense<0.000000e+00> : vector<24x16xf32>
    %4 = tpu.matmul %1, %3, %cst {dimension_numbers = #tpu.dot_dimension_numbers<[1], [0], [0], [1], [0, 0, 1, 1], [], []>} : vector<24x32xbf16>, vector<32x16xbf16>, vector<24x16xf32> -> vector<24x16xf32>
    %c0_3 = arith.constant 0 : index
    %c0_4 = arith.constant 0 : index
    %5 = vector.load %arg2[%c0_3, %c0_4] : memref<24x32xf32, #tpu.memory_space<vmem>>, vector<24x32xf32>
    %6 = arith.truncf %5 : vector<24x32xf32> to vector<24x32xbf16>
    %c0_5 = arith.constant 0 : index
    %c0_6 = arith.constant 0 : index
    %7 = vector.load %arg5[%c0_5, %c0_6] : memref<32x16xf32, #tpu.memory_space<vmem>>, vector<32x16xf32>
    %8 = arith.truncf %7 : vector<32x16xf32> to vector<32x16xbf16>
    %cst_7 = arith.constant dense<0.000000e+00> : vector<24x16xf32>
    %9 = tpu.matmul %6, %8, %cst_7 {dimension_numbers = #tpu.dot_dimension_numbers<[1], [0], [0], [1], [0, 0, 1, 1], [], []>} : vector<24x32xbf16>, vector<32x16xbf16>, vector<24x16xf32> -> vector<24x16xf32>
    %10 = arith.addf %4, %9 : vector<24x16xf32>
    %c0_8 = arith.constant 0 : index
    %c0_9 = arith.constant 0 : index
    %11 = vector.load %arg3[%c0_8, %c0_9] : memref<24x6xf32, #tpu.memory_space<vmem>>, vector<24x6xf32>
    %12 = arith.truncf %11 : vector<24x6xf32> to vector<24x6xbf16>
    %c0_10 = arith.constant 0 : index
    %c0_11 = arith.constant 0 : index
    %13 = vector.load %arg6[%c0_10, %c0_11] : memref<6x16xf32, #tpu.memory_space<vmem>>, vector<6x16xf32>
    %14 = arith.truncf %13 : vector<6x16xf32> to vector<6x16xbf16>
    %cst_12 = arith.constant dense<0.000000e+00> : vector<24x16xf32>
    %15 = tpu.matmul %12, %14, %cst_12 {dimension_numbers = #tpu.dot_dimension_numbers<[1], [0], [0], [1], [0, 0, 1, 1], [], []>} : vector<24x6xbf16>, vector<6x16xbf16>, vector<24x16xf32> -> vector<24x16xf32>
    %16 = arith.addf %10, %15 : vector<24x16xf32>
    %c0_13 = arith.constant 0 : index
    %c0_14 = arith.constant 0 : index
    %17 = vector.load %arg7[%c0_13, %c0_14] : memref<1x16xf32, #tpu.memory_space<vmem>>, vector<1x16xf32>
    %18 = vector.broadcast %17 : vector<1x16xf32> to vector<24x16xf32>
    %19 = arith.addf %16, %18 : vector<24x16xf32>
    %cst_15 = arith.constant 0.000000e+00 : f32
    %20 = vector.broadcast %cst_15 : f32 to vector<24x16xf32>
    %21 = arith.maximumf %19, %20 : vector<24x16xf32>
    %c0_16 = arith.constant 0 : index
    %c0_17 = arith.constant 0 : index
    %22 = vector.load %arg8[%c0_16, %c0_17] : memref<1x16xf32, #tpu.memory_space<vmem>>, vector<1x16xf32>
    %23 = vector.broadcast %22 : vector<1x16xf32> to vector<24x16xf32>
    %24 = arith.mulf %21, %23 : vector<24x16xf32>
    %cst_18 = arith.constant dense<0.000000e+00> : vector<24xf32>
    %25 = vector.multi_reduction <add>, %24, %cst_18 [1] : vector<24x16xf32> to vector<24xf32>
    %26 = vector.shape_cast %25 : vector<24xf32> to vector<24x1xf32>
    %c0_19 = arith.constant 0 : index
    %c0_20 = arith.constant 0 : index
    %27 = vector.load %arg9[%c0_19, %c0_20] : memref<1x1xf32, #tpu.memory_space<vmem>>, vector<1x1xf32>
    %28 = vector.broadcast %27 : vector<1x1xf32> to vector<24x1xf32>
    %29 = arith.addf %26, %28 : vector<24x1xf32>
    %c0_21 = arith.constant 0 : index
    %c0_22 = arith.constant 0 : index
    %30 = vector.load %arg10[%c0_21, %c0_22] : memref<24x1xf32, #tpu.memory_space<vmem>>, vector<24x1xf32>
    tpu.vector_store %arg10[%c0_21, %c0_22], %29 {strides = array<i32>} : memref<24x1xf32, #tpu.memory_space<vmem>>, vector<24x1xf32>,
    return
  }
  func.func @transform_0(%arg0: i32) -> (i32, i32) {
    %c0_i32 = arith.constant 0 : i32
    %c0_i32_0 = arith.constant 0 : i32
    return %arg0, %c0_i32 : i32, i32
  }
  func.func @transform_1(%arg0: i32) -> (i32, i32) {
    %c0_i32 = arith.constant 0 : i32
    %c0_i32_0 = arith.constant 0 : i32
    return %arg0, %c0_i32 : i32, i32
  }
  func.func @transform_2(%arg0: i32) -> (i32, i32) {
    %c0_i32 = arith.constant 0 : i32
    %c0_i32_0 = arith.constant 0 : i32
    return %arg0, %c0_i32 : i32, i32
  }
  func.func @transform_3(%arg0: i32) -> (i32, i32) {
    %c0_i32 = arith.constant 0 : i32
    %c0_i32_0 = arith.constant 0 : i32
    %c0_i32_1 = arith.constant 0 : i32
    return %c0_i32, %c0_i32_0 : i32, i32
  }
  func.func @transform_4(%arg0: i32) -> (i32, i32) {
    %c0_i32 = arith.constant 0 : i32
    %c0_i32_0 = arith.constant 0 : i32
    %c0_i32_1 = arith.constant 0 : i32
    return %c0_i32, %c0_i32_0 : i32, i32
  }
  func.func @transform_5(%arg0: i32) -> (i32, i32) {
    %c0_i32 = arith.constant 0 : i32
    %c0_i32_0 = arith.constant 0 : i32
    %c0_i32_1 = arith.constant 0 : i32
    return %c0_i32, %c0_i32_0 : i32, i32
  }
  func.func @transform_6(%arg0: i32) -> (i32, i32) {
    %c0_i32 = arith.constant 0 : i32
    %c0_i32_0 = arith.constant 0 : i32
    %c0_i32_1 = arith.constant 0 : i32
    return %c0_i32, %c0_i32_0 : i32, i32
  }
  func.func @transform_7(%arg0: i32) -> (i32, i32) {
    %c0_i32 = arith.constant 0 : i32
    %c0_i32_0 = arith.constant 0 : i32
    %c0_i32_1 = arith.constant 0 : i32
    return %c0_i32, %c0_i32_0 : i32, i32
  }
  func.func @transform_8(%arg0: i32) -> (i32, i32) {
    %c0_i32 = arith.constant 0 : i32
    %c0_i32_0 = arith.constant 0 : i32
    %c0_i32_1 = arith.constant 0 : i32
    return %c0_i32, %c0_i32_0 : i32, i32
  }
  func.func @transform_9(%arg0: i32) -> (i32, i32) {
    %c0_i32 = arith.constant 0 : i32
    %c0_i32_0 = arith.constant 0 : i32
    return %arg0, %c0_i32 : i32, i32
  }
}

</mosaic_0001>

<bundles_post_ra>
// kernel: gnn_forward.6
= control target key start
LH: loop header
LB: loop body
LE: loop exit
PB: predicated region body
PF: predicated region fallthrough
CT: control target
= control target key end

     0   :  { %13 = vsyncpa [#allocation3], 0  ;;  %s449_s0 = inlined_call_operand.vmem [shape: f32[10,8], index: 0, kind: input, shape index: {}]   ;;  %s450_s1 = inlined_call_operand.hbm [shape: f32[1,8], index: 1, kind: input, shape index: {}]   ;;  %s451_s2 = inlined_call_operand.hbm [shape: f32[1,8], index: 2, kind: input, shape index: {}]   ;;  %s452_s3 = inlined_call_operand.vmem [shape: f32[20,6], index: 3, kind: input, shape index: {}]   ;;  %s453_s4 = inlined_call_operand.hbm [shape: f32[1,6], index: 4, kind: input, shape index: {}]   ;;  %s454_s5 = inlined_call_operand.hbm [shape: f32[1,6], index: 5, kind: input, shape index: {}]   ;;  %s455_s6 = inlined_call_operand.vmem [shape: f32[10,8], index: 6, kind: output, shape index: {0}]   ;;  %s456_s7 = inlined_call_operand.vmem [shape: f32[20,6], index: 7, kind: output, shape index: {1}]  }
   0x1   :  { %14 = vsyncpa [#allocation5], 0  ;;  %s34_s26 = sshll.u32 %s451_s2, 4  ;;  %s35_s26 = int_to_ptr.hbm [resolvable:$true] %s34_s26 }
   0x2   :  { %15 = vsyncpa [#allocation8], 0  ;;  %s346_s27 = smov [#allocation4]   ;;  %s23_s8 = sshll.u32 %s450_s1, 4  ;;  %s24_s8 = int_to_ptr.hbm [resolvable:$true] %s23_s8 }
   0x3   :  { %s36_s28 = sshll.u32 %s346_s27, 4  ;;  %s347_s9 = smov [#allocation2]   ;;  %s37_s28 = int_to_ptr.vmem [resolvable:$true] %s36_s28 }
   0x4   :  { %39 = dma.hbm_to_vmem [thread:$0]  %s35_s26, 16, %s37_s28, [#allocation5]  }
   0x5   :  { %s25_s10 = sshll.u32 %s347_s9, 4  ;;  %s47_s13 = sshll.u32 %s453_s4, 4  ;;  %s26_s10 = int_to_ptr.vmem [resolvable:$true] %s25_s10  ;;  %s48_s13 = int_to_ptr.hbm [resolvable:$true] %s47_s13 }
   0x6   :  { %28 = dma.hbm_to_vmem [thread:$0]  %s24_s8, 16, %s26_s10, [#allocation3]  }
   0x7   :  { %s58_s15 = sshll.u32 %s454_s5, 4  ;;  %s348_s16 = smov [#allocation6]   ;;  %s59_s15 = int_to_ptr.hbm [resolvable:$true] %s58_s15 }
   0x8   :  { %s49_s17 = sshll.u32 %s348_s16, 4  ;;  %s349_s1 = smov [#allocation7]   ;;  %s50_s17 = int_to_ptr.vmem [resolvable:$true] %s49_s17 }
   0x9   :  { %52 = dma.hbm_to_vmem [thread:$0]  %s48_s13, 16, %s50_s17, [#allocation5]  }
   0xa   :  { %s60_s18 = sshll.u32 %s349_s1, 4  ;;  %s61_s18 = int_to_ptr.vmem [resolvable:$true] %s60_s18 }
   0xb   :  { %63 = dma.hbm_to_vmem [thread:$0]  %s59_s15, 16, %s61_s18, [#allocation8]  }
   0xc   :  { %340 = dma.done.wait [#allocation3], 16  }
   0xd   :  { %341 = vsyncadd [#allocation3], 4294967280 }
   0xe   :  { %342 = dma.done.wait [#allocation5], 32  }
   0xf   :  { %343 = vsyncadd [#allocation5], 4294967264 }
  0x10   :  { %344 = dma.done.wait [#allocation8], 16  }
  0x11   :  { %345 = vsyncadd [#allocation8], 4294967280  ;;  %v350_v0 = vmov 10.0   ;;  %v351_v1 = vmov 20.0   ;;  %vm84_vm0 = vcmask 64512   ;;  %vm86_vm1 = vcmask 58368  }
  0x12   :  { %236 = vrcp.f32 %v350_v0  ;;  %vm147_vm2 = vcmask 48128   ;;  %v80_v3 = vld [vmem:[%s449_s0] sm:$0xff]  ;;  %v81_v4 = vld [vmem:[%s449_s0 + $0x8] sm:$0x3]  ;;  %vm151_vm3 = vcmask 44032  }
  0x13   :  { %238 = vrcp.f32 %v351_v1  ;;  %v85_v6 = vsel %vm84_vm0, %v80_v3, 0.0  ;;  %v87_v7 = vsel %vm86_vm1, %v81_v4, 0.0  ;;  %v142_v9 = vld [vmem:[%s452_s3] sm:$0xff]  ;;  %v143_v11 = vld [vmem:[%s452_s3 + $0x8] sm:$0xff]  ;;  %v144_v12 = vld [vmem:[%s452_s3 + $0x10] sm:$0xf] }
  0x14   :  { %v88_v10 = vadd.f32 %v87_v7, %v85_v6  ;;  %v148_v13 = vsel %vm147_vm2, %v142_v9, 0.0  ;;  %v149_v15 = vsel %vm147_vm2, %v143_v11, 0.0  ;;  %v152_v16 = vsel %vm151_vm3, %v144_v12, 0.0 }
  0x15   :  { %v150_v19 = vadd.f32 %v149_v15, %v148_v13 }
  0x16   :  { %v89_v18 = vrot.slane %v88_v10, 4 }
  0x17   :  { %v153_v23 = vadd.f32 %v152_v16, %v150_v19 }
  0x18   :  { %v237_v2 = vpop.eup %236  ;;  %v90_v22 = vadd.f32 %v89_v18, %v88_v10 }
  0x19   :  { %v239_v5 = vpop.eup %238  ;;  %v96_v8 = vmul.f32 10.0, %v237_v2  ;;  %v154_v25 = vrot.slane %v153_v23, 4  ;;  %vm100_vm4 = vweird.f32 %v237_v2 }
  0x1a   :  { %v161_v17 = vmul.f32 20.0, %v239_v5  ;;  %v91_v24 = vrot.slane %v90_v22, 2  ;;  %vm165_vm5 = vweird.f32 %v239_v5 }
  0x1b   :  { %v97_v14 = vsub.f32 1.0, %v96_v8  ;;  %v155_v29 = vadd.f32 %v154_v25, %v153_v23 }
  0x1c   :  { %v162_v21 = vsub.f32 1.0, %v161_v17  ;;  %v92_v28 = vadd.f32 %v91_v24, %v90_v22  ;;  %v233_v24 = vld [vmem:[#allocation4] ss:$0 sm:$0xff] }
  0x1d   :  { %v98_v20 = vmul.f32 %v237_v2, %v97_v14  ;;  %v156_v31 = vrot.slane %v155_v29, 2 }
  0x1e   :  { %v163_v27 = vmul.f32 %v239_v5, %v162_v21  ;;  %v93_v30 = vrot.slane %v92_v28, 1 }
  0x1f   :  { %v99_v26 = vadd.f32 %v237_v2, %v98_v20  ;;  %v157_v35 = vadd.f32 %v156_v31, %v155_v29  ;;  %v232_v20 = vld [vmem:[#allocation2] ss:$0 sm:$0xff] }
  0x20   :  { %v164_v33 = vadd.f32 %v239_v5, %v163_v27  ;;  %v94_v34 = vadd.f32 %v93_v30, %v92_v28 }
  0x21   :  { %v101_v32 = vsel %vm100_vm4, %v237_v2, %v99_v26  ;;  %v158_v37 = vrot.slane %v157_v35, 1 }
  0x22   :  { %v102_v36 = vmul.f32 %v101_v32, %v94_v34  ;;  %v166_v38 = vsel %vm165_vm5, %v239_v5, %v164_v33 }
  0x23   :  { %v159_v41 = vadd.f32 %v158_v37, %v157_v35  ;;  %v235_v35 = vld [vmem:[#allocation7] ss:$0 sm:$0xff] }
  0x24   :  { %v103_v39 = vsub.f32 %v80_v3, %v102_v36  ;;  %v104_v40 = vsub.f32 %v81_v4, %v102_v36 }
  0x25   :  { %v167_v44 = vmul.f32 %v166_v38, %v159_v41 }
  0x26   :  { %v105_v42 = vmul.f32 %v103_v39, %v103_v39  ;;  %v106_v43 = vmul.f32 %v104_v40, %v104_v40 }
  0x27   :  { %v168_v47 = vsub.f32 %v142_v9, %v167_v44  ;;  %v169_v48 = vsub.f32 %v143_v11, %v167_v44  ;;  %v170_v50 = vsub.f32 %v144_v12, %v167_v44 }
  0x28   :  { %v107_v45 = vsel %vm84_vm0, %v105_v42, 0.0  ;;  %v108_v46 = vsel %vm86_vm1, %v106_v43, 0.0 }
  0x29   :  { %v109_v49 = vadd.f32 %v108_v46, %v107_v45  ;;  %v171_v51 = vmul.f32 %v168_v47, %v168_v47  ;;  %v172_v52 = vmul.f32 %v169_v48, %v169_v48  ;;  %v173_v54 = vmul.f32 %v170_v50, %v170_v50 }
  0x2b   :  { %v110_v53 = vrot.slane %v109_v49, 4  ;;  %v174_v55 = vsel %vm147_vm2, %v171_v51, 0.0  ;;  %v175_v56 = vsel %vm147_vm2, %v172_v52, 0.0  ;;  %v177_v59 = vsel %vm151_vm3, %v173_v54, 0.0 }
  0x2c   :  { %v176_v58 = vadd.f32 %v175_v56, %v174_v55 }
  0x2d   :  { %v111_v57 = vadd.f32 %v110_v53, %v109_v49 }
  0x2e   :  { %v178_v61 = vadd.f32 %v177_v59, %v176_v58 }
  0x2f   :  { %v112_v60 = vrot.slane %v111_v57, 2 }
  0x30   :  { %v179_v63 = vrot.slane %v178_v61, 4 }
  0x31   :  { %v113_v62 = vadd.f32 %v112_v60, %v111_v57 }
  0x32   :  { %v180_v1 = vadd.f32 %v179_v63, %v178_v61 }
  0x33   :  { %v114_v0 = vrot.slane %v113_v62, 1 }
  0x34   :  { %v181_v3 = vrot.slane %v180_v1, 2 }
  0x35   :  { %v115_v2 = vadd.f32 %v114_v0, %v113_v62 }
  0x36   :  { %v182_v5 = vadd.f32 %v181_v3, %v180_v1 }
  0x37   :  { %v116_v4 = vmul.f32 %v115_v2, %v101_v32  ;;  %v234_v32 = vld [vmem:[#allocation6] ss:$0 sm:$0xff] }
  0x38   :  { %v183_v7 = vrot.slane %v182_v5, 1 }
  0x39   :  { %v117_v6 = vadd.f32 1e-05, %v116_v4 }
  0x3a   :  { %v184_v8 = vadd.f32 %v183_v7, %v182_v5 }
  0x3b   :  { %240 = vrsqrt.f32 %v117_v6  ;;  %vm124_vm6 = vweird.f32 %v117_v6 }
  0x3c   :  { %v185_v9 = vmul.f32 %v184_v8, %v166_v38 }
  0x3e   :  { %v186_v10 = vadd.f32 1e-05, %v185_v9 }
  0x40   :  { %242 = vrsqrt.f32 %v186_v10  ;;  %vm193_vm9 = vweird.f32 %v186_v10 }
  0x41   :  { %v241_v11 = vpop.eup %240 }
  0x42   :  { %v119_v12 = vmul.f32 %v241_v11, %v117_v6  ;;  %vm125_vm7 = vweird.f32 %v241_v11 }
  0x43   :  { %vm126_vm8 = vmor %vm124_vm6, %vm125_vm7 }
  0x44   :  { %v120_v13 = vmul.f32 %v241_v11, %v119_v12 }
  0x46   :  { %v121_v14 = vmul.f32 0.5, %v120_v13  ;;  %v243_v15 = vpop.eup %242 }
  0x47   :  { %v188_v17 = vmul.f32 %v243_v15, %v186_v10  ;;  %vm194_vm10 = vweird.f32 %v243_v15 }
  0x48   :  { %v122_v16 = vsub.f32 1.5, %v121_v14  ;;  %vm195_vm11 = vmor %vm193_vm9, %vm194_vm10 }
  0x49   :  { %v189_v19 = vmul.f32 %v243_v15, %v188_v17 }
  0x4a   :  { %v123_v18 = vmul.f32 %v241_v11, %v122_v16 }
  0x4b   :  { %v190_v22 = vmul.f32 0.5, %v189_v19 }
  0x4c   :  { %v127_v21 = vsel %vm126_vm8, %v241_v11, %v123_v18 }
  0x4d   :  { %v128_v23 = vmul.f32 %v127_v21, %v103_v39  ;;  %v129_v25 = vmul.f32 %v127_v21, %v104_v40  ;;  %v191_v26 = vsub.f32 1.5, %v190_v22 }
  0x4f   :  { %v133_v27 = vmul.f32 %v232_v20, %v128_v23  ;;  %v134_v28 = vmul.f32 %v232_v20, %v129_v25  ;;  %v192_v29 = vmul.f32 %v243_v15, %v191_v26 }
  0x51   :  { %v138_v30 = vadd.f32 %v233_v24, %v133_v27  ;;  %v139_v31 = vadd.f32 %v233_v24, %v134_v28  ;;  %v196_v33 = vsel %vm195_vm11, %v243_v15, %v192_v29 }
  0x52   :  { %v197_v34 = vmul.f32 %v196_v33, %v168_v47  ;;  %v198_v36 = vmul.f32 %v196_v33, %v169_v48  ;;  %v199_v37 = vmul.f32 %v196_v33, %v170_v50 }
  0x53   :  { %140 = vst.msk [vmem:[%s455_s6] sm:$0xff] %vm84_vm0, %v138_v30 }
  0x54   :  { %141 = vst.msk [vmem:[%s455_s6 + $0x8] sm:$0x3] %vm86_vm1, %v139_v31  ;;  %v203_v38 = vmul.f32 %v234_v32, %v197_v34  ;;  %v204_v39 = vmul.f32 %v234_v32, %v198_v36  ;;  %v205_v40 = vmul.f32 %v234_v32, %v199_v37 }
  0x56   :  { %v209_v41 = vadd.f32 %v235_v35, %v203_v38  ;;  %v210_v42 = vadd.f32 %v235_v35, %v204_v39  ;;  %v211_v43 = vadd.f32 %v235_v35, %v205_v40 }
  0x58   :  { %212 = vst.msk [vmem:[%s456_s7] sm:$0xff] %vm147_vm2, %v209_v41 }
  0x59   :  { %213 = vst.msk [vmem:[%s456_s7 + $0x8] sm:$0xff] %vm147_vm2, %v210_v42 }
  0x5a   :  { %214 = vst.msk [vmem:[%s456_s7 + $0x10] sm:$0xf] %vm151_vm3, %v211_v43 }
  0x5b   :  { %223 = vsyncpa [#allocation3], 1 }
  0x5c   :  { %224 = vsyncpa [#allocation5], 1 }
  0x5d   :  { %225 = vsyncpa [#allocation8], 1 }

// kernel: gnn_forward.7
= control target key start
LH: loop header
LB: loop body
LE: loop exit
PB: predicated region body
PF: predicated region fallthrough
CT: control target
= control target key end

     0   :  { %s506_s9 = smov 0   ;;  %s508_s10 = smov 0   ;;  %s633_s0 = inlined_call_operand.vmem [shape: f32[128,8], index: 0, kind: input, shape index: {}]   ;;  %s634_s1 = inlined_call_operand.vmem [shape: f32[2,8,16], index: 1, kind: input, shape index: {}]   ;;  %s635_s2 = inlined_call_operand.vmem [shape: bf16[2,128,16], index: 2, kind: output, shape index: {}]  }
   0x1   :  { %s510_s11 = smov 0  }
   0x2 LB: > { %s24_s12 = sadd.s32 1, %s485_s10  ;;  %p425_p0 = scmp.ge.s32.totalorder %s489_s11, 1  ;;  %s489_s11 = sphi %s510_s11, %s12_s11   ;;  %s485_s10 = sphi %s508_s10, %s637_s10   ;;  %s481_s9 = sphi %s506_s9, %s636_s9  }
   0x3   : > { %p26_p1 = scmp.ge.s32.totalorder %s24_s12, 2  ;;  %p136_p2 = scmp.lt.s32.totalorder %s489_s11, 3 }
   0x5   : > { %s639_s12 = smov (%p26_p1, %s24_s12), 0  ;;  %p137_p3 = pnand %p425_p0, %p136_p2 }
   0x6   : > { %p172_p4 = scmp.lt.s32.totalorder (!%p137_p3), %s481_s9, 1 }
   0x7   : > { %140 = sbr.rel (%p137_p3) target bundleno = 183 (0xb7), region = 28 }
   0xc   : > { %s641_s9 = smov (!%p172_p4, %s481_s9), 1  ;;  %v187_v0 = vld [vmem:[%s633_s0] sm:$0xff]  ;;  %v188_v1 = vld [vmem:[%s633_s0 + $0x8] sm:$0xff]  ;;  %vm238_vm0 = vcmask 1043456   ;;  %vm213_vm1 = vcmask 64512   ;;  %v189_v15 = vld [vmem:[%s633_s0 + $0x10] sm:$0xff] }
   0xd   : > { %s426_s13 = sshll.u32 %s641_s9, 3  ;;  %v191_v2 = vld [vmem:[%s633_s0 + $0x20] sm:$0xff]  ;;  %v192_v4 = vld [vmem:[%s633_s0 + $0x28] sm:$0xff]  ;;  %v203_v11 = vpack.c.bf16 %v188_v1, %v187_v0  ;;  %v190_v16 = vld [vmem:[%s633_s0 + $0x18] sm:$0xff]  ;;  %s439_s25 = sshll.u32 %s641_s9, 6  ;;  %vm307_vm2 = vcmask 125952  }
   0xe   : > { %s175_s16 = scalar_lea.vmem %s634_s1, %s426_s13  ;;  %v195_v5 = vld [vmem:[%s633_s0 + $0x40] sm:$0xff]  ;;  %v196_v7 = vld [vmem:[%s633_s0 + $0x48] sm:$0xff]  ;;  %v205_v12 = vpack.c.bf16 %v192_v4, %v191_v2  ;;  %v193_v17 = vld [vmem:[%s633_s0 + $0x30] sm:$0xff]  ;;  %v204_v23 = vpack.c.bf16 %v190_v16, %v189_v15  ;;  %s590_s28 = scalar_lea.vmem %s635_s2, %s439_s25 }
   0xf   : > { %v211_v3 = vld [vmem:[%s175_s16] sm:$0xff]  ;;  %v200_v9 = vld [vmem:[%s633_s0 + $0x68] sm:$0xff]  ;;  %v207_v13 = vpack.c.bf16 %v196_v7, %v195_v5  ;;  %v194_v18 = vld [vmem:[%s633_s0 + $0x38] sm:$0xff] }
  0x10   : > { %v212_v6 = vpack.c.bf16 %v211_v3, %v211_v3  ;;  %v199_v8 = vld [vmem:[%s633_s0 + $0x60] sm:$0xff]  ;;  %v197_v19 = vld [vmem:[%s633_s0 + $0x50] sm:$0xff]  ;;  %v198_v20 = vld [vmem:[%s633_s0 + $0x58] sm:$0xff]  ;;  %v206_v24 = vpack.c.bf16 %v194_v18, %v193_v17 }
  0x11   : > { %v209_v14 = vpack.c.bf16 %v200_v9, %v199_v8  ;;  %v201_v21 = vld [vmem:[%s633_s0 + $0x70] sm:$0xff]  ;;  %v202_v22 = vld [vmem:[%s633_s0 + $0x78] sm:$0xff]  ;;  %v208_v25 = vpack.c.bf16 %v198_v20, %v197_v19 }
  0x12   : > { %v240_v10 = vsel %vm238_vm0, %v212_v6, 0  ;;  %v210_v26 = vpack.c.bf16 %v202_v22, %v201_v21 }
  0x13   : > { %249 = vmatpush.bf16.msra.mxu0 %v240_v10  ;;  %440 = vmatpush.bf16.msra.mxu1 %v240_v10 }
  0x14   : > { %441 = vmatpush.bf16.msra.mxu2 %v240_v10  ;;  %442 = vmatpush.bf16.msra.mxu3 %v240_v10 }
  0x16   : > { %429 = vmatmul.msk.bf16.vlgmr.msra.gmra.mxu0 %vm213_vm1, %v203_v11  ;;  %431 = vmatmul.msk.bf16.vlgmr.msra.gmra.mxu1 %vm213_vm1, %v205_v12 }
  0x17   : > { %433 = vmatmul.msk.bf16.vlgmr.msra.gmra.mxu2 %vm213_vm1, %v207_v13  ;;  %435 = vmatmul.msk.bf16.vlgmr.msra.gmra.mxu3 %vm213_vm1, %v209_v14 }
  0x26   : > { %430 = vmatmul.msk.bf16.gmra.mxu0 %vm213_vm1, %v204_v23  ;;  %432 = vmatmul.msk.bf16.gmra.mxu1 %vm213_vm1, %v206_v24 }
  0x27   : > { %434 = vmatmul.msk.bf16.gmra.mxu2 %vm213_vm1, %v208_v25  ;;  %436 = vmatmul.msk.bf16.gmra.mxu3 %vm213_vm1, %v210_v26 }
  0x93   : > { %v251_v27 = vpop.f32.mrf.mxu0  ;;  %v261_v28 = vpop.f32.mrf.mxu1 }
  0x94   : > { %v291_v29 = vpack.c.bf16 %v251_v27, %v251_v27  ;;  %v295_v30 = vpack.c.bf16 %v261_v28, %v261_v28 }
  0x96   : > { %308 = vst.msk [vmem:[%s590_s28] sm:$0xf] %vm307_vm2, %v291_v29 }
  0x97   : > { %312 = vst.msk [vmem:[%s590_s28 + $0x10] sm:$0xf] %vm307_vm2, %v295_v30 }
  0x9a   : > { %v271_v31 = vpop.f32.mrf.mxu2  ;;  %v281_v32 = vpop.f32.mrf.mxu3 }
  0x9b   : > { %v299_v33 = vpack.c.bf16 %v271_v31, %v271_v31  ;;  %v303_v34 = vpack.c.bf16 %v281_v32, %v281_v32  ;;  %v253_v35 = vpop.f32.mrf.mxu0  ;;  %v263_v36 = vpop.f32.mrf.mxu1 }
  0x9c   : > { %v292_v37 = vpack.c.bf16 %v253_v35, %v253_v35  ;;  %v296_v38 = vpack.c.bf16 %v263_v36, %v263_v36 }
  0x9d   : > { %316 = vst.msk [vmem:[%s590_s28 + $0x20] sm:$0xf] %vm307_vm2, %v299_v33 }
  0x9e   : > { %320 = vst.msk [vmem:[%s590_s28 + $0x30] sm:$0xf] %vm307_vm2, %v303_v34 }
  0x9f   : > { %309 = vst.msk [vmem:[%s590_s28 + $0x4] sm:$0xf] %vm307_vm2, %v292_v37 }
  0xa0   : > { %313 = vst.msk [vmem:[%s590_s28 + $0x14] sm:$0xf] %vm307_vm2, %v296_v38 }
  0xa2   : > { %v273_v39 = vpop.f32.mrf.mxu2  ;;  %v283_v40 = vpop.f32.mrf.mxu3 }
  0xa3   : > { %v300_v41 = vpack.c.bf16 %v273_v39, %v273_v39  ;;  %v304_v42 = vpack.c.bf16 %v283_v40, %v283_v40  ;;  %v256_v43 = vpop.f32.mrf.mxu0  ;;  %v266_v44 = vpop.f32.mrf.mxu1 }
  0xa4   : > { %v293_v45 = vpack.c.bf16 %v256_v43, %v256_v43  ;;  %v297_v46 = vpack.c.bf16 %v266_v44, %v266_v44 }
  0xa5   : > { %317 = vst.msk [vmem:[%s590_s28 + $0x24] sm:$0xf] %vm307_vm2, %v300_v41 }
  0xa6   : > { %321 = vst.msk [vmem:[%s590_s28 + $0x34] sm:$0xf] %vm307_vm2, %v304_v42 }
  0xa7   : > { %310 = vst.msk [vmem:[%s590_s28 + $0x8] sm:$0xf] %vm307_vm2, %v293_v45 }
  0xa8   : > { %314 = vst.msk [vmem:[%s590_s28 + $0x18] sm:$0xf] %vm307_vm2, %v297_v46 }
  0xaa   : > { %v276_v47 = vpop.f32.mrf.mxu2  ;;  %v286_v48 = vpop.f32.mrf.mxu3 }
  0xab   : > { %v301_v49 = vpack.c.bf16 %v276_v47, %v276_v47  ;;  %v305_v50 = vpack.c.bf16 %v286_v48, %v286_v48  ;;  %v258_v51 = vpop.f32.mrf.mxu0  ;;  %v268_v52 = vpop.f32.mrf.mxu1 }
  0xac   : > { %v294_v53 = vpack.c.bf16 %v258_v51, %v258_v51  ;;  %v298_v54 = vpack.c.bf16 %v268_v52, %v268_v52 }
  0xad   : > { %318 = vst.msk [vmem:[%s590_s28 + $0x28] sm:$0xf] %vm307_vm2, %v301_v49 }
  0xae   : > { %322 = vst.msk [vmem:[%s590_s28 + $0x38] sm:$0xf] %vm307_vm2, %v305_v50 }
  0xaf   : > { %311 = vst.msk [vmem:[%s590_s28 + $0xc] sm:$0xf] %vm307_vm2, %v294_v53 }
  0xb0   : > { %315 = vst.msk [vmem:[%s590_s28 + $0x1c] sm:$0xf] %vm307_vm2, %v298_v54 }
  0xb2   : > { %v278_v55 = vpop.f32.mrf.mxu2  ;;  %v288_v56 = vpop.f32.mrf.mxu3 }
  0xb3   : > { %v302_v57 = vpack.c.bf16 %v278_v55, %v278_v55  ;;  %v306_v58 = vpack.c.bf16 %v288_v56, %v288_v56 }
  0xb5   : > { %319 = vst.msk [vmem:[%s590_s28 + $0x2c] sm:$0xf] %vm307_vm2, %v302_v57 }
  0xb6   : > { %323 = vst.msk [vmem:[%s590_s28 + $0x3c] sm:$0xf] %vm307_vm2, %v306_v58 }
  0xb7 PF: > { %s12_s11 = sadd.s32 1, %s489_s11   ;;  %s636_s9 = smov %s485_s10 }
  0xb8   : > { %p9_p5 = scmp.ge.s32.totalorder %s12_s11, 4   ;;  %s637_s10 = smov %s639_s12 }
  0xba   :  { %11 = sbr.rel (!%p9_p5) target bundleno = 2 (0x2), region = 61 }

// kernel: gnn_forward.8
= control target key start
LH: loop header
LB: loop body
LE: loop exit
PB: predicated region body
PF: predicated region fallthrough
CT: control target
= control target key end

     0   :  { %vm674_vm0 = vcmask 130048   ;;  %vm807_vm1 = vcmask 261120   ;;  %s1818_s1 = inlined_call_operand.vmem [shape: bf16[2,128,128], index: 1, kind: input, shape index: {}]   ;;  %s1819_s0 = inlined_call_operand.vmem [shape: bf16[2,128,16], index: 0, kind: input, shape index: {}]   ;;  %s1820_s2 = inlined_call_operand.vmem [shape: f32[1,32], index: 2, kind: input, shape index: {}]   ;;  %s1821_s3 = inlined_call_operand.vmem [shape: f32[128,32], index: 3, kind: output, shape index: {}]  }
   0x1   :  { %v1237_v0 = vld [vmem:[%s1818_s1 + $0x68] sm:$0xff]   ;;  %v1242_v1 = vld [vmem:[%s1818_s1 + $0x60] sm:$0xff]   ;;  %v1270_v9 = vld [vmem:[%s1818_s1 + $0x70] sm:$0xff]  }
   0x2   :  { %v1247_v2 = vld [vmem:[%s1818_s1 + $0x40] sm:$0xff]   ;;  %v1010_v3 = vunpack.c.l.bf16 %v1237_v0  ;;  %v1006_v4 = vunpack.c.l.bf16 %v1242_v1  ;;  %v1011_v6 = vunpack.c.h.bf16 %v1237_v0  ;;  %v1007_v7 = vunpack.c.h.bf16 %v1242_v1  ;;  %v1275_v10 = vld [vmem:[%s1818_s1 + $0x48] sm:$0xff]   ;;  %v1289_v14 = vld [vmem:[%s1818_s1 + $0x50] sm:$0xff]  }
   0x3   :  { %v990_v5 = vunpack.c.l.bf16 %v1247_v2  ;;  %v991_v8 = vunpack.c.h.bf16 %v1247_v2  ;;  %v1014_v11 = vunpack.c.l.bf16 %v1270_v9  ;;  %v994_v12 = vunpack.c.l.bf16 %v1275_v10  ;;  %v1303_v18 = vld [vmem:[%s1818_s1 + $0x20] sm:$0xff]   ;;  %v1322_v23 = vld [vmem:[%s1818_s1 + $0x78] sm:$0xff]   ;;  %v1341_v28 = vld [vmem:[%s1818_s1 + $0x28] sm:$0xff]  }
   0x4   :  { %364 = vmax.xlane.f32.xlu2 %v1010_v3  ;;  %360 = vmax.xlane.f32.xlu0 %v1006_v4  ;;  %v995_v13 = vunpack.c.h.bf16 %v1275_v10  ;;  %v999_v15 = vunpack.c.h.bf16 %v1289_v14  ;;  %v1015_v16 = vunpack.c.h.bf16 %v1270_v9  ;;  %v998_v17 = vunpack.c.l.bf16 %v1289_v14  ;;  %v1308_v19 = vld [vmem:[%s1818_s1] sm:$0xff]   ;;  %v1336_v27 = vld [vmem:[%s1818_s1 + $0x58] sm:$0xff]   ;;  %v1355_v32 = vld [vmem:[%s1818_s1 + $0x8] sm:$0xff]  }
   0x5   :  { %344 = vmax.xlane.f32.xlu1 %v990_v5  ;;  %v974_v20 = vunpack.c.l.bf16 %v1303_v18  ;;  %v958_v21 = vunpack.c.l.bf16 %v1308_v19  ;;  %v975_v22 = vunpack.c.h.bf16 %v1303_v18  ;;  %v959_v24 = vunpack.c.h.bf16 %v1308_v19  ;;  %v955_v33 = vld [vmem:[%s1819_s0 + $0x78] sm:$0xff]  ;;  %v954_v34 = vld [vmem:[%s1819_s0 + $0x70] sm:$0xff]  ;;  %v953_v38 = vld [vmem:[%s1819_s0 + $0x68] sm:$0xff] }
   0x6   :  { %v1019_v25 = vunpack.c.h.bf16 %v1322_v23  ;;  %v1018_v26 = vunpack.c.l.bf16 %v1322_v23  ;;  %v1002_v29 = vunpack.c.l.bf16 %v1336_v27  ;;  %v978_v30 = vunpack.c.l.bf16 %v1341_v28  ;;  %529 = vmatpush.bf16.msra.mxu1 %v955_v33  ;;  %1043 = vmatpush.bf16.msra.mxu3 %v955_v33  ;;  %v1378_v39 = vld [vmem:[%s1818_s1 + $0x30] sm:$0xff]   ;;  %v1397_v44 = vld [vmem:[%s1818_s1 + $0x38] sm:$0xff]   ;;  %v952_v51 = vld [vmem:[%s1819_s0 + $0x60] sm:$0xff] }
   0x7   :  { %v1003_v31 = vunpack.c.h.bf16 %v1336_v27  ;;  %v979_v35 = vunpack.c.h.bf16 %v1341_v28  ;;  %v963_v36 = vunpack.c.h.bf16 %v1355_v32  ;;  %v962_v37 = vunpack.c.l.bf16 %v1355_v32  ;;  %v1383_v40 = vld [vmem:[%s1818_s1 + $0x10] sm:$0xff]   ;;  %v1411_v48 = vld [vmem:[%s1818_s1 + $0x18] sm:$0xff]   ;;  %v949_v55 = vld [vmem:[%s1819_s0 + $0x48] sm:$0xff] }
   0x8   :  { %v982_v41 = vunpack.c.l.bf16 %v1378_v39  ;;  %v966_v42 = vunpack.c.l.bf16 %v1383_v40  ;;  %v983_v43 = vunpack.c.h.bf16 %v1378_v39  ;;  %v967_v45 = vunpack.c.h.bf16 %v1383_v40  ;;  %v951_v52 = vld [vmem:[%s1819_s0 + $0x58] sm:$0xff]  ;;  %v950_v53 = vld [vmem:[%s1819_s0 + $0x50] sm:$0xff]  ;;  %v948_v57 = vld [vmem:[%s1819_s0 + $0x40] sm:$0xff] }
   0x9   :  { %v987_v46 = vunpack.c.h.bf16 %v1397_v44  ;;  %v986_v47 = vunpack.c.l.bf16 %v1397_v44  ;;  %v970_v49 = vunpack.c.l.bf16 %v1411_v48  ;;  %v971_v50 = vunpack.c.h.bf16 %v1411_v48  ;;  %v947_v54 = vld [vmem:[%s1819_s0 + $0x38] sm:$0xff]  ;;  %v946_v56 = vld [vmem:[%s1819_s0 + $0x30] sm:$0xff]  ;;  %v945_v58 = vld [vmem:[%s1819_s0 + $0x28] sm:$0xff] }
   0xa   :  { %530 = vmatpush.bf16.msra.mxu1 %v954_v34  ;;  %1044 = vmatpush.bf16.msra.mxu3 %v954_v34  ;;  %v944_v59 = vld [vmem:[%s1819_s0 + $0x20] sm:$0xff]  ;;  %v943_v60 = vld [vmem:[%s1819_s0 + $0x18] sm:$0xff]  ;;  %v942_v33 = vld [vmem:[%s1819_s0 + $0x10] sm:$0xff] }
   0xb   :  { %1035 = vmatpush.bf16.msra.mxu2 %v947_v54  ;;  %230 = vmatpush.bf16.msra.mxu0 %v947_v54 }
   0xc   :  { %366 = vmax.xlane.f32.xlu2 %v1011_v6  ;;  %362 = vmax.xlane.f32.xlu0 %v1007_v7 }
   0xd   :  { %346 = vmax.xlane.f32.xlu1 %v991_v8 }
   0xe   :  { %531 = vmatpush.bf16.msra.mxu1 %v953_v38  ;;  %1045 = vmatpush.bf16.msra.mxu3 %v953_v38 }
   0xf   :  { %1036 = vmatpush.bf16.msra.mxu2 %v946_v56  ;;  %231 = vmatpush.bf16.msra.mxu0 %v946_v56 }
  0x12   :  { %532 = vmatpush.bf16.msra.mxu1 %v952_v51  ;;  %1046 = vmatpush.bf16.msra.mxu3 %v952_v51  ;;  %v941_v51 = vld [vmem:[%s1819_s0 + $0x8] sm:$0xff] }
  0x13   :  { %1037 = vmatpush.bf16.msra.mxu2 %v945_v58  ;;  %232 = vmatpush.bf16.msra.mxu0 %v945_v58  ;;  %v940_v58 = vld [vmem:[%s1819_s0] sm:$0xff]  ;;  %s1213_s0 = smov 16  }
  0x14   :  { %368 = vmax.xlane.f32.xlu2 %v1014_v11  ;;  %348 = vmax.xlane.f32.xlu0 %v994_v12 }
  0x15   :  { %350 = vmax.xlane.f32.xlu1 %v995_v13 }
  0x16   :  { %533 = vmatpush.bf16.msra.mxu1 %v951_v52  ;;  %1047 = vmatpush.bf16.msra.mxu3 %v951_v52 }
  0x17   :  { %1038 = vmatpush.bf16.msra.mxu2 %v944_v59  ;;  %233 = vmatpush.bf16.msra.mxu0 %v944_v59 }
  0x1a   :  { %534 = vmatpush.bf16.msra.mxu1 %v950_v53  ;;  %1048 = vmatpush.bf16.msra.mxu3 %v950_v53 }
  0x1b   :  { %1039 = vmatpush.bf16.msra.mxu2 %v943_v60  ;;  %234 = vmatpush.bf16.msra.mxu0 %v943_v60 }
  0x1c   :  { %354 = vmax.xlane.f32.xlu2 %v999_v15  ;;  %370 = vmax.xlane.f32.xlu0 %v1015_v16 }
  0x1d   :  { %352 = vmax.xlane.f32.xlu1 %v998_v17 }
  0x1e   :  { %535 = vmatpush.bf16.msra.mxu1 %v949_v55  ;;  %1049 = vmatpush.bf16.msra.mxu3 %v949_v55 }
  0x1f   :  { %1040 = vmatpush.bf16.msra.mxu2 %v942_v33  ;;  %235 = vmatpush.bf16.msra.mxu0 %v942_v33 }
  0x22   :  { %536 = vmatpush.bf16.msra.mxu1 %v948_v57  ;;  %1050 = vmatpush.bf16.msra.mxu3 %v948_v57 }
  0x23   :  { %1041 = vmatpush.bf16.msra.mxu2 %v941_v51  ;;  %236 = vmatpush.bf16.msra.mxu0 %v941_v51 }
  0x24   :  { %62 = vmax.xlane.f32.xlu0 %v974_v20  ;;  %46 = vmax.xlane.f32.xlu2 %v958_v21 }
  0x25   :  { %64 = vmax.xlane.f32.xlu1 %v975_v22 }
  0x27   :  { %1042 = vmatpush.bf16.msra.mxu2 %v940_v58  ;;  %237 = vmatpush.bf16.msra.mxu0 %v940_v58 }
  0x2c   :  { %48 = vmax.xlane.f32.xlu0 %v959_v24  ;;  %374 = vmax.xlane.f32.xlu2 %v1019_v25 }
  0x2d   :  { %372 = vmax.xlane.f32.xlu1 %v1018_v26 }
  0x34   :  { %356 = vmax.xlane.f32.xlu0 %v1002_v29  ;;  %66 = vmax.xlane.f32.xlu2 %v978_v30 }
  0x35   :  { %358 = vmax.xlane.f32.xlu1 %v1003_v31 }
  0x3c   :  { %68 = vmax.xlane.f32.xlu0 %v979_v35  ;;  %52 = vmax.xlane.f32.xlu2 %v963_v36 }
  0x3d   :  { %50 = vmax.xlane.f32.xlu1 %v962_v37 }
  0x44   :  { %70 = vmax.xlane.f32.xlu0 %v982_v41  ;;  %54 = vmax.xlane.f32.xlu2 %v966_v42 }
  0x45   :  { %72 = vmax.xlane.f32.xlu1 %v983_v43 }
  0x4c   :  { %56 = vmax.xlane.f32.xlu0 %v967_v45  ;;  %76 = vmax.xlane.f32.xlu2 %v987_v46 }
  0x4d   :  { %74 = vmax.xlane.f32.xlu1 %v986_v47 }
  0x54   :  { %58 = vmax.xlane.f32.xlu0 %v970_v49 }
  0x55   :  { %60 = vmax.xlane.f32.xlu1 %v971_v50 }
  0x77   :  { %v365_v61 = vpop.xlane.xlu2 %364  ;;  %v361_v62 = vpop.xlane.xlu0 %360 }
  0x78   :  { %v345_v63 = vpop.xlane.xlu1 %344  ;;  %v384_v34 = vsub.f32 %v1006_v4, %v361_v62  ;;  %v386_v2 = vsub.f32 %v1010_v3, %v365_v61 }
  0x79   :  { %v376_v38 = vsub.f32 %v990_v5, %v345_v63 }
  0x7a   :  { %v408_v52 = vmul.f32 1.442695, %v384_v34 }
  0x7b   :  { %v392_v55 = vmul.f32 1.442695, %v376_v38 }
  0x7c   :  { %1053 = vpow2.f32 %v408_v52 }
  0x7d   :  { %1055 = vpow2.f32 %v392_v55 }
  0x7f   :  { %v367_v53 = vpop.xlane.xlu2 %366  ;;  %v363_v54 = vpop.xlane.xlu0 %362 }
  0x80   :  { %v385_v56 = vsub.f32 %v1007_v7, %v363_v54  ;;  %v347_v57 = vpop.xlane.xlu1 %346  ;;  %v387_v63 = vsub.f32 %v1011_v6, %v367_v53  ;;  %v412_v54 = vmul.f32 1.442695, %v386_v2 }
  0x81   :  { %v377_v4 = vsub.f32 %v991_v8, %v347_v57 }
  0x82   :  { %v410_v5 = vmul.f32 1.442695, %v385_v56  ;;  %v1466_v62 = vpop.eup %1053  ;;  %v414_v61 = vmul.f32 1.442695, %v387_v63 }
  0x83   :  { %v394_v59 = vmul.f32 1.442695, %v377_v4  ;;  %v1470_v8 = vpop.eup %1055 }
  0x84   :  { %1057 = vpow2.f32 %v410_v5 }
  0x85   :  { %1059 = vpow2.f32 %v394_v59 }
  0x86   :  { %1061 = vpow2.f32 %v412_v54 }
  0x87   :  { %v369_v1 = vpop.xlane.xlu2 %368  ;;  %v349_v7 = vpop.xlane.xlu0 %348  ;;  %1063 = vpow2.f32 %v414_v61 }
  0x88   :  { %v351_v60 = vpop.xlane.xlu1 %350  ;;  %v378_v34 = vsub.f32 %v994_v12, %v349_v7  ;;  %v388_v4 = vsub.f32 %v1014_v11, %v369_v1 }
  0x89   :  { %v379_v51 = vsub.f32 %v995_v13, %v351_v60 }
  0x8a   :  { %v1474_v33 = vpop.eup %1057  ;;  %v396_v0 = vmul.f32 1.442695, %v378_v34 }
  0x8b   :  { %v1478_v38 = vpop.eup %1059  ;;  %v460_v52 = vpack.c.bf16 %v1474_v33, %v1466_v62  ;;  %v398_v55 = vmul.f32 1.442695, %v379_v51 }
  0x8c   :  { %v456_v3 = vpack.c.bf16 %v1478_v38, %v1470_v8  ;;  %1065 = vpow2.f32 %v396_v0  ;;  %v1486_v10 = vpop.eup %1061 }
  0x8d   :  { %557 = vmatmul.bf16.vlgmr.msra.gmra.mxu3 %v460_v52  ;;  %1067 = vpow2.f32 %v398_v55  ;;  %v1488_v57 = vpop.eup %1063 }
  0x8e   :  { %537 = vmatmul.bf16.vlgmr.msra.gmra.mxu1 %v456_v3  ;;  %v461_v52 = vpack.c.bf16 %v1488_v57, %v1486_v10 }
  0x8f   :  { %v355_v6 = vpop.xlane.xlu2 %354  ;;  %v371_v53 = vpop.xlane.xlu0 %370 }
  0x90   :  { %v353_v12 = vpop.xlane.xlu1 %352  ;;  %v381_v60 = vsub.f32 %v999_v15, %v355_v6  ;;  %v389_v11 = vsub.f32 %v1015_v16, %v371_v53 }
  0x92   :  { %v1496_v7 = vpop.eup %1065  ;;  %v402_v15 = vmul.f32 1.442695, %v381_v60 }
  0x93   :  { %v1502_v63 = vpop.eup %1067 }
  0x94   :  { %v457_v18 = vpack.c.bf16 %v1502_v63, %v1496_v7 }
  0x97   :  { %v63_v13 = vpop.xlane.xlu0 %62  ;;  %v47_v56 = vpop.xlane.xlu2 %46 }
  0x98   :  { %v65_v5 = vpop.xlane.xlu1 %64  ;;  %v86_v58 = vsub.f32 %v974_v20, %v63_v13  ;;  %v78_v59 = vsub.f32 %v958_v21, %v47_v56  ;;  %v380_v20 = vsub.f32 %v998_v17, %v353_v12  ;;  %v416_v21 = vmul.f32 1.442695, %v388_v4 }
  0x99   :  { %v87_v2 = vsub.f32 %v975_v22, %v65_v5  ;;  %v418_v22 = vmul.f32 1.442695, %v389_v11 }
  0x9a   :  { %v110_v1 = vmul.f32 1.442695, %v86_v58  ;;  %v94_v34 = vmul.f32 1.442695, %v78_v59  ;;  %v400_v9 = vmul.f32 1.442695, %v380_v20 }
  0x9b   :  { %v112_v51 = vmul.f32 1.442695, %v87_v2 }
  0x9c   :  { %1069 = vpow2.f32 %v110_v1 }
  0x9d   :  { %1071 = vpow2.f32 %v112_v51  ;;  %562 = vmatmul.bf16.gmra.mxu3 %v461_v52 }
  0x9e   :  { %1073 = vpow2.f32 %v94_v34  ;;  %542 = vmatmul.bf16.gmra.mxu1 %v457_v18 }
  0x9f   :  { %v49_v16 = vpop.xlane.xlu0 %48  ;;  %v375_v54 = vpop.xlane.xlu2 %374  ;;  %1075 = vpow2.f32 %v416_v21 }
  0xa0   :  { %v373_v14 = vpop.xlane.xlu1 %372  ;;  %v79_v17 = vsub.f32 %v959_v24, %v49_v16  ;;  %1077 = vpow2.f32 %v402_v15  ;;  %v391_v4 = vsub.f32 %v1019_v25, %v375_v54 }
  0xa1   :  { %1079 = vpow2.f32 %v418_v22  ;;  %v390_v19 = vsub.f32 %v1018_v26, %v373_v14 }
  0xa2   :  { %v1514_v3 = vpop.eup %1069  ;;  %v96_v61 = vmul.f32 1.442695, %v79_v17  ;;  %1081 = vpow2.f32 %v400_v9  ;;  %v422_v34 = vmul.f32 1.442695, %v391_v4 }
  0xa3   :  { %v1516_v0 = vpop.eup %1071  ;;  %v420_v11 = vmul.f32 1.442695, %v390_v19 }
  0xa4   :  { %v1074_v6 = vpop.eup %1073  ;;  %1083 = vpow2.f32 %v96_v61  ;;  %v162_v53 = vpack.c.bf16 %v1516_v0, %v1514_v3 }
  0xa5   :  { %126 = vadd.xlane.f32.xlu2 %v1074_v6  ;;  %v1520_v55 = vpop.eup %1075  ;;  %1085 = vpow2.f32 %v420_v11 }
  0xa6   :  { %258 = vmatmul.bf16.vlgmr.msra.gmra.mxu2 %v162_v53  ;;  %v1522_v12 = vpop.eup %1077  ;;  %1087 = vpow2.f32 %v422_v34 }
  0xa7   :  { %v357_v24 = vpop.xlane.xlu0 %356  ;;  %v67_v13 = vpop.xlane.xlu2 %66 }
  0xa8   :  { %v1526_v56 = vpop.eup %1079  ;;  %v359_v5 = vpop.xlane.xlu1 %358  ;;  %v382_v59 = vsub.f32 %v1002_v29, %v357_v24  ;;  %v88_v2 = vsub.f32 %v978_v30, %v67_v13 }
  0xa9   :  { %v1530_v58 = vpop.eup %1081  ;;  %v383_v26 = vsub.f32 %v1003_v31, %v359_v5  ;;  %v462_v23 = vpack.c.bf16 %v1526_v56, %v1520_v55 }
  0xaa   :  { %v1084_v60 = vpop.eup %1083  ;;  %v404_v25 = vmul.f32 1.442695, %v382_v59  ;;  %v458_v20 = vpack.c.bf16 %v1522_v12, %v1530_v58  ;;  %v114_v29 = vmul.f32 1.442695, %v88_v2 }
  0xab   :  { %128 = vadd.xlane.f32.xlu0 %v1084_v60  ;;  %v158_v1 = vpack.c.bf16 %v1084_v60, %v1074_v6  ;;  %v406_v51 = vmul.f32 1.442695, %v383_v26  ;;  %v1548_v16 = vpop.eup %1085 }
  0xac   :  { %1089 = vpow2.f32 %v404_v25  ;;  %v1550_v54 = vpop.eup %1087 }
  0xad   :  { %238 = vmatmul.bf16.vlgmr.msra.gmra.mxu0 %v158_v1  ;;  %567 = vmatmul.bf16.gmra.mxu3 %v462_v23  ;;  %1091 = vpow2.f32 %v114_v29  ;;  %v463_v5 = vpack.c.bf16 %v1550_v54, %v1548_v16 }
  0xae   :  { %547 = vmatmul.bf16.gmra.mxu1 %v458_v20  ;;  %1093 = vpow2.f32 %v406_v51 }
  0xaf   :  { %v69_v30 = vpop.xlane.xlu0 %68  ;;  %v53_v21 = vpop.xlane.xlu2 %52 }
  0xb0   :  { %v51_v27 = vpop.xlane.xlu1 %50  ;;  %v89_v31 = vsub.f32 %v979_v35, %v69_v30  ;;  %v81_v52 = vsub.f32 %v963_v36, %v53_v21 }
  0xb1   :  { %v80_v15 = vsub.f32 %v962_v37, %v51_v27 }
  0xb2   :  { %v116_v18 = vmul.f32 1.442695, %v89_v31  ;;  %v100_v22 = vmul.f32 1.442695, %v81_v52  ;;  %v1552_v28 = vpop.eup %1089 }
  0xb3   :  { %v98_v9 = vmul.f32 1.442695, %v80_v15  ;;  %v1554_v14 = vpop.eup %1091 }
  0xb4   :  { %1095 = vpow2.f32 %v116_v18  ;;  %v1558_v17 = vpop.eup %1093 }
  0xb5   :  { %1097 = vpow2.f32 %v98_v9  ;;  %v459_v60 = vpack.c.bf16 %v1558_v17, %v1552_v28 }
  0xb6   :  { %1099 = vpow2.f32 %v100_v22 }
  0xb7   :  { %v71_v35 = vpop.xlane.xlu0 %70  ;;  %v55_v36 = vpop.xlane.xlu2 %54 }
  0xb8   :  { %v73_v32 = vpop.xlane.xlu1 %72  ;;  %v82_v37 = vsub.f32 %v966_v42, %v55_v36  ;;  %v90_v61 = vsub.f32 %v982_v41, %v71_v35 }
  0xb9   :  { %v91_v53 = vsub.f32 %v983_v43, %v73_v32 }
  0xba   :  { %v1096_v6 = vpop.eup %1095  ;;  %v102_v19 = vmul.f32 1.442695, %v82_v37  ;;  %v118_v59 = vmul.f32 1.442695, %v90_v61 }
  0xbb   :  { %v1098_v24 = vpop.eup %1097  ;;  %v163_v13 = vpack.c.bf16 %v1096_v6, %v1554_v14  ;;  %v120_v41 = vmul.f32 1.442695, %v91_v53 }
  0xbc   :  { %v1100_v4 = vpop.eup %1099  ;;  %130 = vadd.xlane.f32.xlu1 %v1098_v24  ;;  %1101 = vpow2.f32 %v102_v19 }
  0xbd   :  { %v159_v42 = vpack.c.bf16 %v1100_v4, %v1098_v24  ;;  %263 = vmatmul.bf16.gmra.mxu2 %v163_v13  ;;  %132 = vadd.xlane.f32.xlu2 %v1100_v4  ;;  %1103 = vpow2.f32 %v118_v59 }
  0xbe   :  { %572 = vmatmul.bf16.gmra.mxu3 %v463_v5  ;;  %552 = vmatmul.bf16.gmra.mxu1 %v459_v60  ;;  %1105 = vpow2.f32 %v120_v41 }
  0xbf   :  { %243 = vmatmul.bf16.gmra.mxu0 %v159_v42  ;;  %v57_v39 = vpop.xlane.xlu0 %56  ;;  %v77_v34 = vpop.xlane.xlu2 %76 }
  0xc0   :  { %v75_v43 = vpop.xlane.xlu1 %74  ;;  %v83_v2 = vsub.f32 %v967_v45, %v57_v39  ;;  %v93_v30 = vsub.f32 %v987_v46, %v77_v34 }
  0xc1   :  { %v92_v51 = vsub.f32 %v986_v47, %v75_v43 }
  0xc2   :  { %v104_v11 = vmul.f32 1.442695, %v83_v2  ;;  %v1102_v26 = vpop.eup %1101 }
  0xc3   :  { %134 = vadd.xlane.f32.xlu0 %v1102_v26  ;;  %v1104_v1 = vpop.eup %1103  ;;  %v122_v15 = vmul.f32 1.442695, %v92_v51 }
  0xc4   :  { %1107 = vpow2.f32 %v104_v11  ;;  %v1106_v25 = vpop.eup %1105 }
  0xc5   :  { %v164_v52 = vpack.c.bf16 %v1106_v25, %v1104_v1 }
  0xc7   :  { %v59_v23 = vpop.xlane.xlu0 %58 }
  0xc8   :  { %v61_v20 = vpop.xlane.xlu1 %60  ;;  %v84_v29 = vsub.f32 %v970_v49, %v59_v23  ;;  %v124_v49 = vmul.f32 1.442695, %v93_v30 }
  0xc9   :  { %v85_v40 = vsub.f32 %v971_v50, %v61_v20 }
  0xca   :  { %v1108_v45 = vpop.eup %1107  ;;  %v106_v21 = vmul.f32 1.442695, %v84_v29 }
  0xcb   :  { %v108_v27 = vmul.f32 1.442695, %v85_v40  ;;  %136 = vadd.xlane.f32.xlu1 %v1108_v45  ;;  %v160_v31 = vpack.c.bf16 %v1108_v45, %v1102_v26 }
  0xcc   :  { %1109 = vpow2.f32 %v106_v21 }
  0xcd   :  { %1111 = vpow2.f32 %v108_v27  ;;  %268 = vmatmul.bf16.gmra.mxu2 %v164_v52 }
  0xce   :  { %1113 = vpow2.f32 %v122_v15 }
  0xcf   :  { %248 = vmatmul.bf16.gmra.mxu0 %v160_v31  ;;  %1115 = vpow2.f32 %v124_v49 }
  0xd2   :  { %v1110_v47 = vpop.eup %1109 }
  0xd3   :  { %v1112_v48 = vpop.eup %1111  ;;  %142 = vadd.xlane.f32.xlu1 %v1514_v3  ;;  %138 = vadd.xlane.f32.xlu2 %v1110_v47 }
  0xd4   :  { %140 = vadd.xlane.f32.xlu0 %v1112_v48  ;;  %v1114_v44 = vpop.eup %1113  ;;  %v161_v18 = vpack.c.bf16 %v1112_v48, %v1110_v47 }
  0xd5   :  { %v1116_v46 = vpop.eup %1115 }
  0xd6   :  { %v165_v50 = vpack.c.bf16 %v1116_v46, %v1114_v44 }
  0xdb   :  { %148 = vadd.xlane.f32.xlu1 %v1096_v6  ;;  %144 = vadd.xlane.f32.xlu2 %v1516_v0 }
  0xdc   :  { %146 = vadd.xlane.f32.xlu0 %v1554_v14 }
  0xdd   :  { %273 = vmatmul.bf16.gmra.mxu2 %v165_v50 }
  0xdf   :  { %253 = vmatmul.bf16.gmra.mxu0 %v161_v18 }
  0xe3   :  { %154 = vadd.xlane.f32.xlu1 %v1114_v44  ;;  %150 = vadd.xlane.f32.xlu2 %v1104_v1 }
  0xe4   :  { %152 = vadd.xlane.f32.xlu0 %v1106_v25 }
  0xeb   :  { %428 = vadd.xlane.f32.xlu1 %v1496_v7  ;;  %424 = vadd.xlane.f32.xlu2 %v1470_v8 }
  0xec   :  { %426 = vadd.xlane.f32.xlu0 %v1478_v38 }
  0xf3   :  { %434 = vadd.xlane.f32.xlu1 %v1522_v12  ;;  %430 = vadd.xlane.f32.xlu2 %v1502_v63 }
  0xf4   :  { %432 = vadd.xlane.f32.xlu0 %v1530_v58 }
  0xfb   :  { %440 = vadd.xlane.f32.xlu1 %v1466_v62  ;;  %436 = vadd.xlane.f32.xlu2 %v1552_v28 }
  0xfc   :  { %438 = vadd.xlane.f32.xlu0 %v1558_v17 }
 0x103   :  { %446 = vadd.xlane.f32.xlu1 %v1488_v57  ;;  %442 = vadd.xlane.f32.xlu2 %v1474_v33 }
 0x104   :  { %444 = vadd.xlane.f32.xlu0 %v1486_v10 }
 0x10b   :  { %452 = vadd.xlane.f32.xlu1 %v1548_v16  ;;  %448 = vadd.xlane.f32.xlu2 %v1520_v55  ;;  %v538_v3 = vpop.f32.mrf.mxu1 }
 0x10c   :  { %450 = vadd.xlane.f32.xlu0 %v1526_v56 }
 0x113   :  { %454 = vadd.xlane.f32.xlu2 %v1550_v54  ;;  %v540_v58 = vpop.f32.mrf.mxu1  ;;  %v558_v54 = vpop.f32.mrf.mxu3 }
 0x114   :  { %156 = vadd.xlane.f32.xlu0 %v1116_v46 }
 0x118   :  { %v1600_v8 = vpop.xlane.xlu2 %126 }
 0x11b   :  { %v543_v28 = vpop.f32.mrf.mxu1  ;;  %v560_v32 = vpop.f32.mrf.mxu3 }
 0x11e   :  { %v1598_v62 = vpop.xlane.xlu0 %128 }
 0x123   :  { %v545_v37 = vpop.f32.mrf.mxu1  ;;  %v563_v4 = vpop.f32.mrf.mxu3 }
 0x12b   :  { %v548_v60 = vpop.f32.mrf.mxu1  ;;  %v565_v2 = vpop.f32.mrf.mxu3 }
 0x12f   :  { %v1602_v38 = vpop.xlane.xlu1 %130 }
 0x130   :  { %v1606_v33 = vpop.xlane.xlu2 %132 }
 0x133   :  { %v550_v26 = vpop.f32.mrf.mxu1  ;;  %v568_v40 = vpop.f32.mrf.mxu3 }
 0x136   :  { %v1604_v57 = vpop.xlane.xlu0 %134 }
 0x13b   :  { %v553_v21 = vpop.f32.mrf.mxu1  ;;  %v570_v44 = vpop.f32.mrf.mxu3 }
 0x13e   :  { %v1608_v10 = vpop.xlane.xlu1 %136 }
 0x146   :  { %v1610_v7 = vpop.xlane.xlu1 %142  ;;  %v1612_v63 = vpop.xlane.xlu2 %138 }
 0x147   :  { %v1614_v0 = vpop.xlane.xlu0 %140 }
 0x14e   :  { %v1616_v55 = vpop.xlane.xlu1 %148  ;;  %v1618_v12 = vpop.xlane.xlu2 %144 }
 0x14f   :  { %v1620_v56 = vpop.xlane.xlu0 %146 }
 0x156   :  { %v1622_v22 = vpop.xlane.xlu1 %154  ;;  %v1624_v9 = vpop.xlane.xlu2 %150 }
 0x157   :  { %v1626_v16 = vpop.xlane.xlu0 %152 }
 0x15e   :  { %v429_v35 = vpop.xlane.xlu1 %428  ;;  %v425_v36 = vpop.xlane.xlu2 %424 }
 0x15f   :  { %v427_v14 = vpop.xlane.xlu0 %426 }
 0x160   :  { %1117 = vrcp.f32 %v427_v14 }
 0x161   :  { %1119 = vrcp.f32 %v425_v36 }
 0x166   :  { %v1118_v17 = vpop.eup %1117  ;;  %v435_v61 = vpop.xlane.xlu1 %434 }
 0x167   :  { %v431_v6 = vpop.xlane.xlu2 %430  ;;  %v1120_v53 = vpop.eup %1119  ;;  %v595_v24 = vmul.f32 %v1118_v17, %v540_v58 }
 0x168   :  { %v433_v19 = vpop.xlane.xlu0 %432  ;;  %v594_v13 = vmul.f32 %v1120_v53, %v538_v3  ;;  %v555_v3 = vpop.f32.mrf.mxu1 }
 0x169   :  { %628 = vrot.lane.b32.xlu2 %v595_v24, %s1213_s0 }
 0x16a   :  { %626 = vrot.lane.b32.xlu1 %v594_v13, %s1213_s0  ;;  %v239_v13 = vpop.f32.mrf.mxu0 }
 0x16e   :  { %v441_v5 = vpop.xlane.xlu1 %440 }
 0x16f   :  { %v437_v59 = vpop.xlane.xlu2 %436  ;;  %1121 = vrcp.f32 %v441_v5 }
 0x170   :  { %v439_v42 = vpop.xlane.xlu0 %438  ;;  %1123 = vrcp.f32 %v429_v35 }
 0x172   :  { %v241_v5 = vpop.f32.mrf.mxu0 }
 0x175   :  { %v1122_v41 = vpop.eup %1121 }
 0x176   :  { %v602_v43 = vmul.f32 %v1122_v41, %v558_v54  ;;  %v447_v1 = vpop.xlane.xlu1 %446  ;;  %v1124_v34 = vpop.eup %1123 }
 0x177   :  { %v443_v39 = vpop.xlane.xlu2 %442  ;;  %v596_v25 = vmul.f32 %v1124_v34, %v543_v28 }
 0x178   :  { %v445_v11 = vpop.xlane.xlu0 %444  ;;  %642 = vrot.lane.b32.xlu0 %v602_v43, %s1213_s0 }
 0x179   :  { %1125 = vrcp.f32 %v445_v11 }
 0x17a   :  { %1127 = vrcp.f32 %v443_v39  ;;  %v1652_v11 = vpop.f32.mrf.mxu0 }
 0x17b   :  { %1129 = vrcp.f32 %v447_v1 }
 0x17c   :  { %1131 = vrcp.f32 %v433_v19 }
 0x17d   :  { %1133 = vrcp.f32 %v431_v6 }
 0x17e   :  { %1135 = vrcp.f32 %v435_v61  ;;  %v453_v47 = vpop.xlane.xlu1 %452 }
 0x17f   :  { %v1126_v23 = vpop.eup %1125  ;;  %v449_v27 = vpop.xlane.xlu2 %448  ;;  %1137 = vrcp.f32 %v439_v42 }
 0x180   :  { %v1128_v20 = vpop.eup %1127  ;;  %v604_v29 = vmul.f32 %v1126_v23, %v563_v4  ;;  %630 = vrot.lane.b32.xlu0 %v596_v25, %s1213_s0  ;;  %1139 = vrcp.f32 %v449_v27  ;;  %v451_v46 = vpop.xlane.xlu0 %450 }
 0x181   :  { %v603_v51 = vmul.f32 %v1128_v20, %v560_v32  ;;  %v1130_v45 = vpop.eup %1129  ;;  %1141 = vrcp.f32 %v453_v47  ;;  %v259_v4 = vpop.f32.mrf.mxu2 }
 0x182   :  { %646 = vrot.lane.b32.xlu1 %v604_v29, %s1213_s0  ;;  %v1132_v30 = vpop.eup %1131  ;;  %v605_v52 = vmul.f32 %v1130_v45, %v565_v2  ;;  %1143 = vrcp.f32 %v451_v46  ;;  %v246_v23 = vpop.f32.mrf.mxu0 }
 0x183   :  { %644 = vrot.lane.b32.xlu2 %v603_v51, %s1213_s0  ;;  %v1134_v31 = vpop.eup %1133  ;;  %v598_v15 = vmul.f32 %v1132_v30, %v548_v60  ;;  %1145 = vrcp.f32 %v437_v59  ;;  %v1648_v60 = vld [vmem:[%s1820_s2] ss:$0 sm:$0xff] }
 0x184   :  { %v597_v49 = vmul.f32 %v1134_v31, %v545_v37  ;;  %v1136_v48 = vpop.eup %1135  ;;  %v573_v37 = vpop.f32.mrf.mxu3 }
 0x185   :  { %v1138_v50 = vpop.eup %1137  ;;  %v599_v58 = vmul.f32 %v1136_v48, %v550_v26 }
 0x186   :  { %v1140_v18 = vpop.eup %1139  ;;  %v601_v54 = vmul.f32 %v1138_v50, %v555_v3 }
 0x187   :  { %v606_v28 = vmul.f32 %v1140_v18, %v568_v40  ;;  %v1142_v35 = vpop.eup %1141  ;;  %v455_v14 = vpop.xlane.xlu2 %454 }
 0x188   :  { %648 = vrot.lane.b32.xlu0 %v605_v52, %s1213_s0  ;;  %v1144_v36 = vpop.eup %1143  ;;  %v608_v17 = vmul.f32 %v1142_v35, %v573_v37  ;;  %1147 = vrcp.f32 %v455_v14  ;;  %v157_v46 = vpop.xlane.xlu0 %156 }
 0x189   :  { %v1146_v32 = vpop.eup %1145  ;;  %v607_v61 = vmul.f32 %v1144_v36, %v570_v44  ;;  %1149 = vrcp.f32 %v1598_v62  ;;  %v261_v59 = vpop.f32.mrf.mxu2 }
 0x18a   :  { %634 = vrot.lane.b32.xlu1 %v598_v15, %s1213_s0  ;;  %v600_v6 = vmul.f32 %v1146_v32, %v553_v21  ;;  %v1664_v30 = vpop.f32.mrf.mxu0 }
 0x18b   :  { %632 = vrot.lane.b32.xlu2 %v597_v49, %s1213_s0 }
 0x18c   :  { %v575_v19 = vpop.f32.mrf.mxu3 }
 0x18e   :  { %v1148_v53 = vpop.eup %1147 }
 0x18f   :  { %v609_v24 = vmul.f32 %v1148_v53, %v575_v19  ;;  %v1150_v42 = vpop.eup %1149 }
 0x190   :  { %636 = vrot.lane.b32.xlu0 %v599_v58, %s1213_s0  ;;  %v296_v41 = vmul.f32 %v1150_v42, %v241_v5 }
 0x191   :  { %v1654_v26 = vpop.f32.mrf.mxu2 }
 0x192   :  { %640 = vrot.lane.b32.xlu1 %v601_v54, %s1213_s0  ;;  %v1676_v35 = vpop.f32.mrf.mxu0 }
 0x193   :  { %650 = vrot.lane.b32.xlu2 %v606_v28, %s1213_s0 }
 0x198   :  { %654 = vrot.lane.b32.xlu0 %v608_v17, %s1213_s0 }
 0x199   :  { %v1656_v25 = vpop.f32.mrf.mxu2 }
 0x19a   :  { %652 = vrot.lane.b32.xlu1 %v607_v61, %s1213_s0 }
 0x19b   :  { %638 = vrot.lane.b32.xlu2 %v600_v6, %s1213_s0 }
 0x1a1   :  { %v269_v21 = vpop.f32.mrf.mxu2 }
 0x1a3   :  { %656 = vrot.lane.b32.xlu2 %v609_v24, %s1213_s0 }
 0x1a9   :  { %v1673_v58 = vpop.f32.mrf.mxu2 }
 0x1c3   :  { %v629_v39 = vpop.permute.xlu2 %628 }
 0x1c4   :  { %v676_v43 = vsel %vm674_vm0, %v296_v41, %v629_v39  ;;  %v1693_v39 = vpop.f32.mrf.mxu2 }
 0x1c5   :  { %v696_v2 = vadd.f32 %v1648_v60, %v676_v43 }
 0x1c7   :  { %v728_v62 = vmin.f32 %v696_v2, 0.0  ;;  %vm712_vm2 = vcmp.gt.f32.partialorder %v696_v2, 0.0 }
 0x1c9   :  { %v745_v1 = vmul.f32 1.442695, %v728_v62 }
 0x1cb   :  { %1151 = vpow2.f32 %v745_v1 }
 0x1cc   :  { %1153 = vrcp.f32 %v1618_v12 }
 0x1cd   :  { %1155 = vrcp.f32 %v1600_v8 }
 0x1ce   :  { %1157 = vrcp.f32 %v1606_v33 }
 0x1cf   :  { %1159 = vrcp.f32 %v1610_v7 }
 0x1d0   :  { %1161 = vrcp.f32 %v1624_v9 }
 0x1d1   :  { %v1152_v34 = vpop.eup %1151 }
 0x1d2   :  { %v925_v20 = vadd.f32 -1.0, %v1152_v34  ;;  %v1154_v51 = vpop.eup %1153 }
 0x1d3   :  { %v1156_v40 = vpop.eup %1155  ;;  %v304_v27 = vmul.f32 %v1154_v51, %v261_v59 }
 0x1d4   :  { %v792_v29 = vsel %vm712_vm2, %v696_v2, %v925_v20  ;;  %v295_v45 = vmul.f32 %v1156_v40, %v239_v13  ;;  %v1158_v44 = vpop.eup %1157  ;;  %v254_v2 = vpop.f32.mrf.mxu0 }
 0x1d5   :  { %809 = vst.msk [vmem:[%s1821_s3 + $0x8] sm:$0xff] %vm807_vm1, %v792_v29  ;;  %v298_v18 = vmul.f32 %v1158_v44, %v246_v23  ;;  %v1160_v28 = vpop.eup %1159 }
 0x1d6   :  { %v1162_v36 = vpop.eup %1161  ;;  %v303_v14 = vmul.f32 %v1160_v28, %v259_v4 }
 0x1d7   :  { %v307_v19 = vmul.f32 %v1162_v36, %v269_v21 }
 0x1dc   :  { %v627_v12 = vpop.permute.xlu1 %626 }
 0x1dd   :  { %v645_v31 = vpop.permute.xlu2 %644  ;;  %v675_v52 = vsel %vm674_vm0, %v295_v45, %v627_v12 }
 0x1de   :  { %v684_v8 = vsel %vm674_vm0, %v304_v27, %v645_v31  ;;  %v695_v15 = vadd.f32 %v1648_v60, %v675_v52 }
 0x1df   :  { %v704_v49 = vadd.f32 %v1648_v60, %v684_v8 }
 0x1e0   :  { %v727_v47 = vmin.f32 %v695_v15, 0.0  ;;  %vm711_vm3 = vcmp.gt.f32.partialorder %v695_v15, 0.0 }
 0x1e1   :  { %v736_v48 = vmin.f32 %v704_v49, 0.0  ;;  %vm720_vm4 = vcmp.gt.f32.partialorder %v704_v49, 0.0 }
 0x1e2   :  { %v743_v50 = vmul.f32 1.442695, %v727_v47 }
 0x1e3   :  { %v761_v33 = vmul.f32 1.442695, %v736_v48 }
 0x1e4   :  { %1163 = vpow2.f32 %v743_v50 }
 0x1e5   :  { %v633_v3 = vpop.permute.xlu2 %632  ;;  %1165 = vpow2.f32 %v761_v33 }
 0x1e6   :  { %v678_v54 = vsel %vm674_vm0, %v298_v18, %v633_v3  ;;  %1167 = vrcp.f32 %v1602_v38  ;;  %v276_v18 = vpop.f32.mrf.mxu2 }
 0x1e7   :  { %v698_v7 = vadd.f32 %v1648_v60, %v678_v54  ;;  %1169 = vrcp.f32 %v1620_v56 }
 0x1e8   :  { %1171 = vrcp.f32 %v1612_v63 }
 0x1e9   :  { %v730_v9 = vmin.f32 %v698_v7, 0.0  ;;  %vm714_vm5 = vcmp.gt.f32.partialorder %v698_v7, 0.0 }
 0x1ea   :  { %v1164_v32 = vpop.eup %1163  ;;  %v643_v17 = vpop.permute.xlu0 %642 }
 0x1eb   :  { %v749_v37 = vmul.f32 1.442695, %v730_v9  ;;  %v1166_v61 = vpop.eup %1165  ;;  %v924_v6 = vadd.f32 -1.0, %v1164_v32  ;;  %v683_v53 = vsel %vm674_vm0, %v303_v14, %v643_v17 }
 0x1ec   :  { %v933_v24 = vadd.f32 -1.0, %v1166_v61  ;;  %v703_v13 = vadd.f32 %v1648_v60, %v683_v53  ;;  %v1168_v4 = vpop.eup %1167 }
 0x1ed   :  { %1173 = vpow2.f32 %v749_v37  ;;  %v651_v38 = vpop.permute.xlu2 %650  ;;  %v791_v5 = vsel %vm711_vm3, %v695_v15, %v924_v6  ;;  %v1170_v41 = vpop.eup %1169  ;;  %v297_v34 = vmul.f32 %v1168_v4, %v1652_v11 }
 0x1ee   :  { %v687_v56 = vsel %vm674_vm0, %v307_v19, %v651_v38  ;;  %808 = vst.msk [vmem:[%s1821_s3] sm:$0xff] %vm807_vm1, %v791_v5  ;;  %v800_v63 = vsel %vm720_vm4, %v704_v49, %v933_v24  ;;  %v735_v59 = vmin.f32 %v703_v13, 0.0  ;;  %1175 = vrcp.f32 %v1604_v57  ;;  %v1172_v43 = vpop.eup %1171  ;;  %v256_v6 = vpop.f32.mrf.mxu0 }
 0x1ef   :  { %v1690_v42 = vadd.f32 %v1648_v60, %v687_v56  ;;  %817 = vst.msk [vmem:[%s1821_s3 + $0x48] sm:$0xff] %vm807_vm1, %v800_v63  ;;  %1177 = vrcp.f32 %v1616_v55  ;;  %v305_v20 = vmul.f32 %v1170_v41, %v1654_v26  ;;  %v301_v51 = vmul.f32 %v1172_v43, %v254_v2 }
 0x1f0   :  { %v759_v62 = vmul.f32 1.442695, %v735_v59  ;;  %1179 = vrcp.f32 %v157_v46  ;;  %vm719_vm6 = vcmp.gt.f32.partialorder %v703_v13, 0.0 }
 0x1f1   :  { %v739_v1 = vmin.f32 %v1690_v42, 0.0  ;;  %vm723_vm7 = vcmp.gt.f32.partialorder %v1690_v42, 0.0 }
 0x1f2   :  { %1181 = vpow2.f32 %v759_v62  ;;  %v631_v29 = vpop.permute.xlu0 %630 }
 0x1f3   :  { %v1174_v23 = vpop.eup %1173  ;;  %v767_v57 = vmul.f32 1.442695, %v739_v1  ;;  %v677_v21 = vsel %vm674_vm0, %v297_v34, %v631_v29 }
 0x1f4   :  { %v927_v40 = vadd.f32 -1.0, %v1174_v23  ;;  %v647_v45 = vpop.permute.xlu1 %646  ;;  %v1706_v27 = vadd.f32 %v1648_v60, %v677_v21  ;;  %v1176_v12 = vpop.eup %1175 }
 0x1f5   :  { %1183 = vpow2.f32 %v767_v57  ;;  %v685_v55 = vsel %vm674_vm0, %v305_v20, %v647_v45  ;;  %v639_v11 = vpop.permute.xlu2 %638  ;;  %v1178_v8 = vpop.eup %1177  ;;  %v299_v33 = vmul.f32 %v1176_v12, %v1664_v30 }
 0x1f6   :  { %v794_v31 = vsel %vm714_vm5, %v698_v7, %v927_v40  ;;  %v1709_v52 = vadd.f32 %v1648_v60, %v685_v55  ;;  %v681_v26 = vsel %vm674_vm0, %v301_v51, %v639_v11  ;;  %v729_v15 = vmin.f32 %v1706_v27, 0.0  ;;  %v1180_v47 = vpop.eup %1179 }
 0x1f7   :  { %811 = vst.msk [vmem:[%s1821_s3 + $0x18] sm:$0xff] %vm807_vm1, %v794_v31  ;;  %v1718_v49 = vadd.f32 %v1648_v60, %v681_v26  ;;  %1185 = vrcp.f32 %v1608_v10  ;;  %v306_v28 = vmul.f32 %v1178_v8, %v1656_v25  ;;  %v310_v9 = vmul.f32 %v1180_v47, %v276_v18 }
 0x1f8   :  { %v737_v48 = vmin.f32 %v1709_v52, 0.0  ;;  %v1182_v44 = vpop.eup %1181  ;;  %1187 = vrcp.f32 %v1614_v0  ;;  %v747_v46 = vmul.f32 1.442695, %v729_v15  ;;  %vm721_vm8 = vcmp.gt.f32.partialorder %v1709_v52, 0.0 }
 0x1f9   :  { %v733_v50 = vmin.f32 %v1718_v49, 0.0  ;;  %v932_v3 = vadd.f32 -1.0, %v1182_v44  ;;  %vm713_vm9 = vcmp.gt.f32.partialorder %v1706_v27, 0.0  ;;  %vm717_vm10 = vcmp.gt.f32.partialorder %v1718_v49, 0.0 }
 0x1fa   :  { %v763_v54 = vmul.f32 1.442695, %v737_v48  ;;  %1189 = vpow2.f32 %v747_v46  ;;  %v649_v10 = vpop.permute.xlu0 %648 }
 0x1fb   :  { %v1184_v7 = vpop.eup %1183  ;;  %v755_v36 = vmul.f32 1.442695, %v733_v50  ;;  %v799_v14 = vsel %vm719_vm6, %v703_v13, %v932_v3  ;;  %v686_v0 = vsel %vm674_vm0, %v306_v28, %v649_v10 }
 0x1fc   :  { %v936_v32 = vadd.f32 -1.0, %v1184_v7  ;;  %1191 = vpow2.f32 %v763_v54  ;;  %v635_v37 = vpop.permute.xlu1 %634  ;;  %816 = vst.msk [vmem:[%s1821_s3 + $0x40] sm:$0xff] %vm807_vm1, %v799_v14  ;;  %v1733_v25 = vadd.f32 %v1648_v60, %v686_v0 }
 0x1fd   :  { %1193 = vpow2.f32 %v755_v36  ;;  %v679_v30 = vsel %vm674_vm0, %v299_v33, %v635_v37  ;;  %v657_v17 = vpop.permute.xlu2 %656  ;;  %v1186_v61 = vpop.eup %1185 }
 0x1fe   :  { %v803_v53 = vsel %vm723_vm7, %v1690_v42, %v936_v32  ;;  %v1738_v19 = vadd.f32 %v1648_v60, %v679_v30  ;;  %v690_v24 = vsel %vm674_vm0, %v310_v9, %v657_v17  ;;  %v1188_v13 = vpop.eup %1187  ;;  %v738_v38 = vmin.f32 %v1733_v25, 0.0 }
 0x1ff   :  { %820 = vst.msk [vmem:[%s1821_s3 + $0x60] sm:$0xff] %vm807_vm1, %v803_v53  ;;  %v1747_v5 = vadd.f32 %v1648_v60, %v690_v24  ;;  %v300_v56 = vmul.f32 %v1186_v61, %v1676_v35  ;;  %1195 = vrcp.f32 %v1622_v22  ;;  %v302_v59 = vmul.f32 %v1188_v13, %v256_v6 }
 0x200   :  { %v731_v4 = vmin.f32 %v1738_v19, 0.0  ;;  %v1190_v63 = vpop.eup %1189  ;;  %1197 = vrcp.f32 %v1626_v16  ;;  %v765_v42 = vmul.f32 1.442695, %v738_v38  ;;  %vm722_vm11 = vcmp.gt.f32.partialorder %v1733_v25, 0.0 }
 0x201   :  { %v742_v41 = vmin.f32 %v1747_v5, 0.0  ;;  %v926_v2 = vadd.f32 -1.0, %v1190_v63  ;;  %vm715_vm12 = vcmp.gt.f32.partialorder %v1738_v19, 0.0  ;;  %vm726_vm13 = vcmp.gt.f32.partialorder %v1747_v5, 0.0 }
 0x202   :  { %v1192_v43 = vpop.eup %1191  ;;  %v751_v62 = vmul.f32 1.442695, %v731_v4  ;;  %1199 = vpow2.f32 %v765_v42  ;;  %v637_v34 = vpop.permute.xlu0 %636 }
 0x203   :  { %v1194_v1 = vpop.eup %1193  ;;  %v934_v35 = vadd.f32 -1.0, %v1192_v43  ;;  %v773_v22 = vmul.f32 1.442695, %v742_v41  ;;  %v793_v16 = vsel %vm713_vm9, %v1706_v27, %v926_v2  ;;  %v680_v57 = vsel %vm674_vm0, %v300_v56, %v637_v34 }
 0x204   :  { %v930_v23 = vadd.f32 -1.0, %v1194_v1  ;;  %1201 = vpow2.f32 %v751_v62  ;;  %v641_v20 = vpop.permute.xlu1 %640  ;;  %810 = vst.msk [vmem:[%s1821_s3 + $0x10] sm:$0xff] %vm807_vm1, %v793_v16  ;;  %v700_v51 = vadd.f32 %v1648_v60, %v680_v57 }
 0x205   :  { %v801_v29 = vsel %vm721_vm8, %v1709_v52, %v934_v35  ;;  %1203 = vpow2.f32 %v773_v22  ;;  %v682_v40 = vsel %vm674_vm0, %v302_v59, %v641_v20  ;;  %v1196_v45 = vpop.eup %1195 }
 0x206   :  { %818 = vst.msk [vmem:[%s1821_s3 + $0x50] sm:$0xff] %vm807_vm1, %v801_v29  ;;  %v797_v21 = vsel %vm717_vm10, %v1718_v49, %v930_v23  ;;  %v702_v55 = vadd.f32 %v1648_v60, %v682_v40  ;;  %v1198_v27 = vpop.eup %1197  ;;  %v732_v11 = vmin.f32 %v700_v51, 0.0  ;;  %v309_v15 = vmul.f32 %v1196_v45, %v1693_v39 }
 0x207   :  { %814 = vst.msk [vmem:[%s1821_s3 + $0x30] sm:$0xff] %vm807_vm1, %v797_v21  ;;  %v308_v8 = vmul.f32 %v1198_v27, %v1673_v58  ;;  %vm716_vm14 = vcmp.gt.f32.partialorder %v700_v51, 0.0 }
 0x208   :  { %v734_v12 = vmin.f32 %v702_v55, 0.0  ;;  %v1200_v31 = vpop.eup %1199  ;;  %v753_v52 = vmul.f32 1.442695, %v732_v11  ;;  %vm718_vm15 = vcmp.gt.f32.partialorder %v702_v55, 0.0 }
 0x209   :  { %v935_v47 = vadd.f32 -1.0, %v1200_v31 }
 0x20a   :  { %v1202_v26 = vpop.eup %1201  ;;  %v757_v48 = vmul.f32 1.442695, %v734_v12  ;;  %1205 = vpow2.f32 %v753_v52  ;;  %v655_v46 = vpop.permute.xlu0 %654 }
 0x20b   :  { %v1204_v49 = vpop.eup %1203  ;;  %v928_v44 = vadd.f32 -1.0, %v1202_v26  ;;  %v802_v50 = vsel %vm722_vm11, %v1733_v25, %v935_v47  ;;  %v689_v18 = vsel %vm674_vm0, %v309_v15, %v655_v46 }
 0x20c   :  { %v939_v33 = vadd.f32 -1.0, %v1204_v49  ;;  %1207 = vpow2.f32 %v757_v48  ;;  %v653_v3 = vpop.permute.xlu1 %652  ;;  %819 = vst.msk [vmem:[%s1821_s3 + $0x58] sm:$0xff] %vm807_vm1, %v802_v50  ;;  %v709_v39 = vadd.f32 %v1648_v60, %v689_v18 }
 0x20d   :  { %v795_v58 = vsel %vm715_vm12, %v1738_v19, %v928_v44  ;;  %v688_v54 = vsel %vm674_vm0, %v308_v8, %v653_v3 }
 0x20e   :  { %812 = vst.msk [vmem:[%s1821_s3 + $0x20] sm:$0xff] %vm807_vm1, %v795_v58  ;;  %v806_v28 = vsel %vm726_vm13, %v1747_v5, %v939_v33  ;;  %v708_v7 = vadd.f32 %v1648_v60, %v688_v54  ;;  %v741_v36 = vmin.f32 %v709_v39, 0.0  ;;  %vm725_vm0 = vcmp.gt.f32.partialorder %v709_v39, 0.0 }
 0x20f   :  { %823 = vst.msk [vmem:[%s1821_s3 + $0x78] sm:$0xff] %vm807_vm1, %v806_v28 }
 0x210   :  { %v740_v10 = vmin.f32 %v708_v7, 0.0  ;;  %v1206_v9 = vpop.eup %1205  ;;  %v771_v14 = vmul.f32 1.442695, %v741_v36  ;;  %vm724_vm2 = vcmp.gt.f32.partialorder %v708_v7, 0.0 }
 0x211   :  { %v929_v0 = vadd.f32 -1.0, %v1206_v9 }
 0x212   :  { %v1208_v32 = vpop.eup %1207  ;;  %v769_v37 = vmul.f32 1.442695, %v740_v10  ;;  %1209 = vpow2.f32 %v771_v14 }
 0x213   :  { %v931_v25 = vadd.f32 -1.0, %v1208_v32  ;;  %v796_v30 = vsel %vm716_vm14, %v700_v51, %v929_v0 }
 0x214   :  { %1211 = vpow2.f32 %v769_v37  ;;  %813 = vst.msk [vmem:[%s1821_s3 + $0x28] sm:$0xff] %vm807_vm1, %v796_v30 }
 0x215   :  { %v798_v60 = vsel %vm718_vm15, %v702_v55, %v931_v25 }
 0x216   :  { %815 = vst.msk [vmem:[%s1821_s3 + $0x38] sm:$0xff] %vm807_vm1, %v798_v60 }
 0x218   :  { %v1210_v17 = vpop.eup %1209 }
 0x219   :  { %v938_v6 = vadd.f32 -1.0, %v1210_v17 }
 0x21a   :  { %v1212_v61 = vpop.eup %1211 }
 0x21b   :  { %v937_v53 = vadd.f32 -1.0, %v1212_v61  ;;  %v805_v19 = vsel %vm725_vm0, %v709_v39, %v938_v6 }
 0x21c   :  { %822 = vst.msk [vmem:[%s1821_s3 + $0x70] sm:$0xff] %vm807_vm1, %v805_v19 }
 0x21d   :  { %v804_v24 = vsel %vm724_vm2, %v708_v7, %v937_v53 }
 0x21e   :  { %821 = vst.msk [vmem:[%s1821_s3 + $0x68] sm:$0xff] %vm807_vm1, %v804_v24 }

// kernel: gnn_forward.9
= control target key start
LH: loop header
LB: loop body
LE: loop exit
PB: predicated region body
PF: predicated region fallthrough
CT: control target
= control target key end

     0   :  { %s514_s9 = smov 0   ;;  %s516_s10 = smov 0   ;;  %s641_s0 = inlined_call_operand.vmem [shape: f32[128,32], index: 0, kind: input, shape index: {}]   ;;  %s642_s1 = inlined_call_operand.vmem [shape: f32[2,32,16], index: 1, kind: input, shape index: {}]   ;;  %s643_s2 = inlined_call_operand.vmem [shape: bf16[2,128,16], index: 2, kind: output, shape index: {}]  }
   0x1   :  { %s518_s11 = smov 0  }
   0x2 LB: > { %s24_s12 = sadd.s32 1, %s493_s10  ;;  %p428_p0 = scmp.ge.s32.totalorder %s497_s11, 1  ;;  %s497_s11 = sphi %s518_s11, %s12_s11   ;;  %s493_s10 = sphi %s516_s10, %s645_s10   ;;  %s489_s9 = sphi %s514_s9, %s644_s9  }
   0x3   : > { %p26_p1 = scmp.ge.s32.totalorder %s24_s12, 2  ;;  %p137_p2 = scmp.lt.s32.totalorder %s497_s11, 3 }
   0x5   : > { %s647_s12 = smov (%p26_p1, %s24_s12), 0  ;;  %p138_p3 = pnand %p428_p0, %p137_p2 }
   0x6   : > { %p174_p4 = scmp.lt.s32.totalorder (!%p138_p3), %s489_s9, 1 }
   0x7   : > { %141 = sbr.rel (%p138_p3) target bundleno = 186 (0xba), region = 28 }
   0xc   : > { %s649_s9 = smov (!%p174_p4, %s489_s9), 1  ;;  %v190_v5 = vld [vmem:[%s641_s0] sm:$0xff]  ;;  %v191_v6 = vld [vmem:[%s641_s0 + $0x8] sm:$0xff]  ;;  %vm220_vm0 = vcmask 261120   ;;  %v192_v18 = vld [vmem:[%s641_s0 + $0x10] sm:$0xff]  ;;  %vm310_vm1 = vcmask 125952  }
   0xd   : > { %s443_s13 = sshll.u32 %s649_s9, 5  ;;  %v194_v8 = vld [vmem:[%s641_s0 + $0x20] sm:$0xff]  ;;  %v195_v9 = vld [vmem:[%s641_s0 + $0x28] sm:$0xff]  ;;  %v206_v14 = vpack.c.bf16 %v191_v6, %v190_v5  ;;  %v193_v19 = vld [vmem:[%s641_s0 + $0x18] sm:$0xff]  ;;  %s444_s25 = sshll.u32 %s649_s9, 6 }
   0xe   : > { %s178_s16 = scalar_lea.vmem %s642_s1, %s443_s13  ;;  %v198_v10 = vld [vmem:[%s641_s0 + $0x40] sm:$0xff]  ;;  %v199_v11 = vld [vmem:[%s641_s0 + $0x48] sm:$0xff]  ;;  %v208_v15 = vpack.c.bf16 %v195_v9, %v194_v8  ;;  %v196_v20 = vld [vmem:[%s641_s0 + $0x30] sm:$0xff]  ;;  %v207_v26 = vpack.c.bf16 %v193_v19, %v192_v18  ;;  %s598_s28 = scalar_lea.vmem %s643_s2, %s444_s25 }
   0xf   : > { %v216_v0 = vld [vmem:[%s178_s16 + $0x10] sm:$0xff]  ;;  %v217_v1 = vld [vmem:[%s178_s16 + $0x18] sm:$0xff]  ;;  %v214_v2 = vld [vmem:[%s178_s16] sm:$0xff]  ;;  %v210_v16 = vpack.c.bf16 %v199_v11, %v198_v10 }
  0x10   : > { %v219_v3 = vpack.c.bf16 %v217_v1, %v216_v0  ;;  %v215_v4 = vld [vmem:[%s178_s16 + $0x8] sm:$0xff]  ;;  %v202_v12 = vld [vmem:[%s641_s0 + $0x60] sm:$0xff]  ;;  %v197_v21 = vld [vmem:[%s641_s0 + $0x38] sm:$0xff] }
  0x11   : > { %v218_v7 = vpack.c.bf16 %v215_v4, %v214_v2  ;;  %v203_v13 = vld [vmem:[%s641_s0 + $0x68] sm:$0xff]  ;;  %v200_v22 = vld [vmem:[%s641_s0 + $0x50] sm:$0xff]  ;;  %v201_v23 = vld [vmem:[%s641_s0 + $0x58] sm:$0xff]  ;;  %v209_v27 = vpack.c.bf16 %v197_v21, %v196_v20 }
  0x12   : > { %251 = vmatpush.bf16.msra.mxu0 %v219_v3  ;;  %445 = vmatpush.bf16.msra.mxu1 %v219_v3  ;;  %v212_v17 = vpack.c.bf16 %v203_v13, %v202_v12  ;;  %v204_v24 = vld [vmem:[%s641_s0 + $0x70] sm:$0xff]  ;;  %v205_v25 = vld [vmem:[%s641_s0 + $0x78] sm:$0xff]  ;;  %v211_v28 = vpack.c.bf16 %v201_v23, %v200_v22 }
  0x13   : > { %446 = vmatpush.bf16.msra.mxu2 %v219_v3  ;;  %447 = vmatpush.bf16.msra.mxu3 %v219_v3  ;;  %v213_v29 = vpack.c.bf16 %v205_v25, %v204_v24 }
  0x16   : > { %252 = vmatpush.bf16.msra.mxu0 %v218_v7  ;;  %448 = vmatpush.bf16.msra.mxu1 %v218_v7 }
  0x17   : > { %449 = vmatpush.bf16.msra.mxu2 %v218_v7  ;;  %450 = vmatpush.bf16.msra.mxu3 %v218_v7 }
  0x19   : > { %433 = vmatmul.msk.bf16.vlgmr.msra.gmra.mxu0 %vm220_vm0, %v206_v14  ;;  %435 = vmatmul.msk.bf16.vlgmr.msra.gmra.mxu1 %vm220_vm0, %v208_v15 }
  0x1a   : > { %437 = vmatmul.msk.bf16.vlgmr.msra.gmra.mxu2 %vm220_vm0, %v210_v16  ;;  %439 = vmatmul.msk.bf16.vlgmr.msra.gmra.mxu3 %vm220_vm0, %v212_v17 }
  0x29   : > { %434 = vmatmul.msk.bf16.gmra.mxu0 %vm220_vm0, %v207_v26  ;;  %436 = vmatmul.msk.bf16.gmra.mxu1 %vm220_vm0, %v209_v27 }
  0x2a   : > { %438 = vmatmul.msk.bf16.gmra.mxu2 %vm220_vm0, %v211_v28  ;;  %440 = vmatmul.msk.bf16.gmra.mxu3 %vm220_vm0, %v213_v29 }
  0x96   : > { %v254_v30 = vpop.f32.mrf.mxu0  ;;  %v264_v31 = vpop.f32.mrf.mxu1 }
  0x97   : > { %v294_v32 = vpack.c.bf16 %v254_v30, %v254_v30  ;;  %v298_v33 = vpack.c.bf16 %v264_v31, %v264_v31 }
  0x99   : > { %311 = vst.msk [vmem:[%s598_s28] sm:$0xf] %vm310_vm1, %v294_v32 }
  0x9a   : > { %315 = vst.msk [vmem:[%s598_s28 + $0x10] sm:$0xf] %vm310_vm1, %v298_v33 }
  0x9d   : > { %v274_v34 = vpop.f32.mrf.mxu2  ;;  %v284_v35 = vpop.f32.mrf.mxu3 }
  0x9e   : > { %v302_v36 = vpack.c.bf16 %v274_v34, %v274_v34  ;;  %v306_v37 = vpack.c.bf16 %v284_v35, %v284_v35  ;;  %v256_v38 = vpop.f32.mrf.mxu0  ;;  %v266_v39 = vpop.f32.mrf.mxu1 }
  0x9f   : > { %v295_v40 = vpack.c.bf16 %v256_v38, %v256_v38  ;;  %v299_v41 = vpack.c.bf16 %v266_v39, %v266_v39 }
  0xa0   : > { %319 = vst.msk [vmem:[%s598_s28 + $0x20] sm:$0xf] %vm310_vm1, %v302_v36 }
  0xa1   : > { %323 = vst.msk [vmem:[%s598_s28 + $0x30] sm:$0xf] %vm310_vm1, %v306_v37 }
  0xa2   : > { %312 = vst.msk [vmem:[%s598_s28 + $0x4] sm:$0xf] %vm310_vm1, %v295_v40 }
  0xa3   : > { %316 = vst.msk [vmem:[%s598_s28 + $0x14] sm:$0xf] %vm310_vm1, %v299_v41 }
  0xa5   : > { %v276_v42 = vpop.f32.mrf.mxu2  ;;  %v286_v43 = vpop.f32.mrf.mxu3 }
  0xa6   : > { %v303_v44 = vpack.c.bf16 %v276_v42, %v276_v42  ;;  %v307_v45 = vpack.c.bf16 %v286_v43, %v286_v43  ;;  %v259_v46 = vpop.f32.mrf.mxu0  ;;  %v269_v47 = vpop.f32.mrf.mxu1 }
  0xa7   : > { %v296_v48 = vpack.c.bf16 %v259_v46, %v259_v46  ;;  %v300_v49 = vpack.c.bf16 %v269_v47, %v269_v47 }
  0xa8   : > { %320 = vst.msk [vmem:[%s598_s28 + $0x24] sm:$0xf] %vm310_vm1, %v303_v44 }
  0xa9   : > { %324 = vst.msk [vmem:[%s598_s28 + $0x34] sm:$0xf] %vm310_vm1, %v307_v45 }
  0xaa   : > { %313 = vst.msk [vmem:[%s598_s28 + $0x8] sm:$0xf] %vm310_vm1, %v296_v48 }
  0xab   : > { %317 = vst.msk [vmem:[%s598_s28 + $0x18] sm:$0xf] %vm310_vm1, %v300_v49 }
  0xad   : > { %v279_v50 = vpop.f32.mrf.mxu2  ;;  %v289_v51 = vpop.f32.mrf.mxu3 }
  0xae   : > { %v304_v52 = vpack.c.bf16 %v279_v50, %v279_v50  ;;  %v308_v53 = vpack.c.bf16 %v289_v51, %v289_v51  ;;  %v261_v54 = vpop.f32.mrf.mxu0  ;;  %v271_v55 = vpop.f32.mrf.mxu1 }
  0xaf   : > { %v297_v56 = vpack.c.bf16 %v261_v54, %v261_v54  ;;  %v301_v57 = vpack.c.bf16 %v271_v55, %v271_v55 }
  0xb0   : > { %321 = vst.msk [vmem:[%s598_s28 + $0x28] sm:$0xf] %vm310_vm1, %v304_v52 }
  0xb1   : > { %325 = vst.msk [vmem:[%s598_s28 + $0x38] sm:$0xf] %vm310_vm1, %v308_v53 }
  0xb2   : > { %314 = vst.msk [vmem:[%s598_s28 + $0xc] sm:$0xf] %vm310_vm1, %v297_v56 }
  0xb3   : > { %318 = vst.msk [vmem:[%s598_s28 + $0x1c] sm:$0xf] %vm310_vm1, %v301_v57 }
  0xb5   : > { %v281_v58 = vpop.f32.mrf.mxu2  ;;  %v291_v59 = vpop.f32.mrf.mxu3 }
  0xb6   : > { %v305_v60 = vpack.c.bf16 %v281_v58, %v281_v58  ;;  %v309_v61 = vpack.c.bf16 %v291_v59, %v291_v59 }
  0xb8   : > { %322 = vst.msk [vmem:[%s598_s28 + $0x2c] sm:$0xf] %vm310_vm1, %v305_v60 }
  0xb9   : > { %326 = vst.msk [vmem:[%s598_s28 + $0x3c] sm:$0xf] %vm310_vm1, %v309_v61 }
  0xba PF: > { %s12_s11 = sadd.s32 1, %s497_s11   ;;  %s644_s9 = smov %s493_s10 }
  0xbb   : > { %p9_p5 = scmp.ge.s32.totalorder %s12_s11, 4   ;;  %s645_s10 = smov %s647_s12 }
  0xbd   :  { %11 = sbr.rel (!%p9_p5) target bundleno = 2 (0x2), region = 61 }

// kernel: gnn_forward.11
= control target key start
LH: loop header
LB: loop body
LE: loop exit
PB: predicated region body
PF: predicated region fallthrough
CT: control target
= control target key end

     0   :  { %vm120_vm0 = vcmask 1042432   ;;  %vm113_vm1 = vcmask 48128   ;;  %vm57_vm2 = vcmask 261120   ;;  %vm162_vm3 = vcmask 130048   ;;  %s325_s4 = inlined_call_operand.vmem [shape: f32[32,16], index: 4, kind: input, shape index: {}]   ;;  %s326_s3 = inlined_call_operand.vmem [shape: f32[32,16], index: 3, kind: input, shape index: {}]   ;;  %s327_s5 = inlined_call_operand.vmem [shape: f32[6,16], index: 5, kind: input, shape index: {}]   ;;  %s328_s2 = inlined_call_operand.vmem [shape: f32[24,6], index: 2, kind: input, shape index: {}]   ;;  %s329_s1 = inlined_call_operand.vmem [shape: f32[24,32], index: 1, kind: input, shape index: {}]   ;;  %s330_s0 = inlined_call_operand.vmem [shape: f32[24,32], index: 0, kind: input, shape index: {}]   ;;  %s331_s6 = inlined_call_operand.vmem [shape: f32[1,16], index: 6, kind: input, shape index: {}]   ;;  %s332_s7 = inlined_call_operand.vmem [shape: f32[1,16], index: 7, kind: input, shape index: {}]   ;;  %s333_s8 = inlined_call_operand.<no memory space> [shape: f32[1,1], index: 8, kind: input, shape index: {}]   ;;  %s334_s9 = inlined_call_operand.vmem [shape: f32[24,1], index: 9, kind: output, shape index: {}]  }
   0x1   :  { %v53_v0 = vld [vmem:[%s325_s4 + $0x10] sm:$0xff]  ;;  %v54_v1 = vld [vmem:[%s325_s4 + $0x18] sm:$0xff]  ;;  %v111_v5 = vld [vmem:[%s327_s5] sm:$0x3f]  ;;  %v14_v30 = vstv %s333_s8  ;;  %vm179_vm4 = vcmask 7168  }
   0x2   :  { %v42_v2 = vld [vmem:[%s326_s3 + $0x10] sm:$0xff]  ;;  %v56_v3 = vpack.c.bf16 %v54_v1, %v53_v0  ;;  %v43_v4 = vld [vmem:[%s326_s3 + $0x18] sm:$0xff]  ;;  %v51_v6 = vld [vmem:[%s325_s4] sm:$0xff]  ;;  %v112_v8 = vpack.c.bf16 %v111_v5, %v111_v5  ;;  %15 = vst [vmem:[#allocation2] sm:$0x1] %v14_v30 }
   0x3   :  { %v45_v7 = vpack.c.bf16 %v43_v4, %v42_v2  ;;  %v52_v9 = vld [vmem:[%s325_s4 + $0x8] sm:$0xff]  ;;  %v40_v10 = vld [vmem:[%s326_s3] sm:$0xff]  ;;  %v48_v22 = vld [vmem:[%s329_s1 + $0x10] sm:$0xff] }
   0x4   :  { %v41_v11 = vld [vmem:[%s326_s3 + $0x8] sm:$0xff]  ;;  %70 = vmatpush.bf16.msra.mxu0 %v56_v3  ;;  %193 = vmatpush.bf16.msra.mxu3 %v56_v3  ;;  %v55_v12 = vpack.c.bf16 %v52_v9, %v51_v6  ;;  %v106_v13 = vld [vmem:[%s328_s2] sm:$0xff]  ;;  %v122_v16 = vsel %vm120_vm0, %v112_v8, 0  ;;  %v50_v24 = vpack.c.bf16 %v48_v22, %v48_v22  ;;  %v108_v26 = vld [vmem:[%s328_s2 + $0x10] sm:$0xff] }
   0x5   :  { %v107_v14 = vld [vmem:[%s328_s2 + $0x8] sm:$0xff]  ;;  %v46_v15 = vld [vmem:[%s329_s1] sm:$0xff]  ;;  %94 = vmatpush.bf16.msra.mxu1 %v45_v7  ;;  %v44_v17 = vpack.c.bf16 %v41_v11, %v40_v10  ;;  %131 = vmatpush.bf16.msra.mxu2 %v122_v16  ;;  %v110_v27 = vpack.c.bf16 %v108_v26, %v108_v26  ;;  %v37_v28 = vld [vmem:[%s330_s0 + $0x10] sm:$0xff] }
   0x6   :  { %v109_v18 = vpack.c.bf16 %v107_v14, %v106_v13  ;;  %v47_v19 = vld [vmem:[%s329_s1 + $0x8] sm:$0xff]  ;;  %v35_v20 = vld [vmem:[%s330_s0] sm:$0xff]  ;;  %v39_v29 = vpack.c.bf16 %v37_v28, %v37_v28 }
   0x7   :  { %v36_v21 = vld [vmem:[%s330_s0 + $0x8] sm:$0xff]  ;;  %v49_v23 = vpack.c.bf16 %v47_v19, %v46_v15  ;;  %v195_v34 = vld [vmem:[%s331_s6] ss:$0 sm:$0xff] }
   0x8   :  { %71 = vmatpush.bf16.msra.mxu0 %v55_v12  ;;  %194 = vmatpush.bf16.msra.mxu3 %v55_v12  ;;  %v38_v25 = vpack.c.bf16 %v36_v21, %v35_v20  ;;  %v196_v39 = vld [vmem:[%s332_s7] ss:$0 sm:$0xff] }
   0x9   :  { %95 = vmatpush.bf16.msra.mxu1 %v44_v17  ;;  %191 = vmatmul.msk.bf16.vlgmr.msra.gmra.mxu2 %vm113_vm1, %v109_v18  ;;  %v197_v63 = vld [vmem:[#allocation2] ss:$0 sm:$0xff] }
   0xb   :  { %187 = vmatmul.msk.bf16.vlgmr.msra.gmra.mxu0 %vm57_vm2, %v49_v23  ;;  %188 = vmatmul.msk.bf16.vlgmr.msra.gmra.mxu3 %vm57_vm2, %v50_v24 }
   0xc   :  { %189 = vmatmul.msk.bf16.vlgmr.msra.gmra.mxu1 %vm57_vm2, %v38_v25 }
  0x19   :  { %192 = vmatmul.msk.bf16.gmra.mxu2 %vm113_vm1, %v110_v27 }
  0x1c   :  { %190 = vmatmul.msk.bf16.gmra.mxu1 %vm57_vm2, %v39_v29 }
  0x88   :  { %v73_v31 = vpop.f32.mrf.mxu0 }
  0x89   :  { %v97_v32 = vpop.f32.mrf.mxu1 }
  0x8a   :  { %v98_v33 = vadd.f32 %v97_v32, %v73_v31 }
  0x8c   :  { %v133_v35 = vpop.f32.mrf.mxu2 }
  0x8d   :  { %v142_v36 = vadd.f32 %v133_v35, %v98_v33 }
  0x8e   :  { %v78_v37 = vpop.f32.mrf.mxu3 }
  0x8f   :  { %v149_v38 = vadd.f32 %v195_v34, %v142_v36 }
  0x90   :  { %v75_v40 = vpop.f32.mrf.mxu0 }
  0x91   :  { %v152_v41 = vmax.f32 %v149_v38, 0.0  ;;  %v99_v42 = vpop.f32.mrf.mxu1 }
  0x92   :  { %v100_v43 = vadd.f32 %v99_v42, %v75_v40 }
  0x93   :  { %v159_v44 = vmul.f32 %v196_v39, %v152_v41 }
  0x94   :  { %v135_v45 = vpop.f32.mrf.mxu2 }
  0x95   :  { %v143_v46 = vadd.f32 %v135_v45, %v100_v43  ;;  %v163_v47 = vsel %vm162_vm3, %v159_v44, 0.0 }
  0x96   :  { %164 = vadd.xlane.f32.xlu0 %v163_v47  ;;  %v80_v48 = vpop.f32.mrf.mxu3 }
  0x97   :  { %v150_v49 = vadd.f32 %v195_v34, %v143_v46 }
  0x99   :  { %v153_v50 = vmax.f32 %v150_v49, 0.0  ;;  %v102_v51 = vpop.f32.mrf.mxu1 }
  0x9a   :  { %v103_v52 = vadd.f32 %v102_v51, %v78_v37 }
  0x9b   :  { %v160_v53 = vmul.f32 %v196_v39, %v153_v50 }
  0x9c   :  { %v138_v54 = vpop.f32.mrf.mxu2 }
  0x9d   :  { %v144_v55 = vadd.f32 %v138_v54, %v103_v52  ;;  %v166_v56 = vsel %vm162_vm3, %v160_v53, 0.0 }
  0x9e   :  { %167 = vadd.xlane.f32.xlu0 %v166_v56 }
  0x9f   :  { %v151_v57 = vadd.f32 %v195_v34, %v144_v55 }
  0xa1   :  { %v154_v58 = vmax.f32 %v151_v57, 0.0  ;;  %v104_v59 = vpop.f32.mrf.mxu1 }
  0xa3   :  { %v161_v60 = vmul.f32 %v196_v39, %v154_v58 }
  0xa4   :  { %v140_v61 = vpop.f32.mrf.mxu2 }
  0xa5   :  { %v169_v62 = vsel %vm162_vm3, %v161_v60, 0.0 }
  0xa6   :  { %170 = vadd.xlane.f32.xlu1 %v169_v62 }
 0x109   :  { %v165_v0 = vpop.xlane.xlu0 %164 }
 0x10a   :  { %v176_v1 = vadd.f32 %v197_v63, %v165_v0 }
 0x10c   :  { %180 = vst.msk [vmem:[%s334_s9] sm:$0xff] %vm179_vm4, %v176_v1 }
 0x111   :  { %v168_v2 = vpop.xlane.xlu0 %167 }
 0x112   :  { %v177_v3 = vadd.f32 %v197_v63, %v168_v2 }
 0x114   :  { %181 = vst.msk [vmem:[%s334_s9 + $0x8] sm:$0xff] %vm179_vm4, %v177_v3 }
 0x119   :  { %v171_v4 = vpop.xlane.xlu1 %170 }
 0x11a   :  { %v178_v5 = vadd.f32 %v197_v63, %v171_v4 }
 0x11c   :  { %182 = vst.msk [vmem:[%s334_s9 + $0x10] sm:$0xff] %vm179_vm4, %v178_v5 }

</bundles_post_ra>
